<compile_context>
chip_gen: v7x
topology: tpu7x:2x2x1
jax: 0.10.0
libtpu: 0.0.40
codegen_flags: <defaults>
</compile_context>

<pallas_src>
import functools
import math

import numpy as np
import jax
import jax.numpy as jnp
from jax.experimental import pallas as pl
from jax.experimental.pallas import tpu as pltpu


# ----------------------------------------------------------------------------
# Polynomial coefficients (trace-time constants).
# With r = x - 2*floor(x/2) - 1 in [-1, 1) (exact for f32 x), periodicity gives
#   sin(pi*x) = -sin(pi*r) = r * S(r^2),     cos(pi*x) = -cos(pi*r) = C(r^2).
# S, C are degree-6 Chebyshev interpolants in u = r^2 on [0, 1]
# (max abs error ~1e-8), so the per-element work is cheap VPU mul/add only.
# ----------------------------------------------------------------------------
def _cheb_fit(f, deg):
    """Interpolate f at Chebyshev nodes on [0, 1]; ascending monomial coeffs."""
    m = deg + 1
    nodes = 0.5 - 0.5 * np.cos((2.0 * np.arange(m) + 1.0) * np.pi / (2.0 * m))
    vander = np.vander(nodes, m, increasing=True)
    return np.linalg.solve(vander, f(nodes))


_SIN_COEF = tuple(float(c) for c in _cheb_fit(
    lambda u: -np.pi * np.sinc(np.sqrt(u)), 6))           # -sin(pi r) / r
_COS_COEF = tuple(float(c) for c in _cheb_fit(
    lambda u: -np.cos(np.pi * np.sqrt(u)), 6))            # -cos(pi r)


def _bpe_kernel(c_ref, k_ref, o_ref, *, bit_depth, fuse_transpose):
    # c_ref: (1, TN)   photon counts, lane-dense
    # k_ref: (2B, 1)   2^-(row mod B) scale column (exact powers of two)
    # o_ref: (TN, 2B)  feature-minor output block (fused transpose path)
    #        (2B, TN)  feature-major block (fallback path)
    two_b = 2 * bit_depth
    x = k_ref[...] * c_ref[...]                    # (2B, TN), exact scaling

    # Exact mod-2 range reduction: sin/cos(pi*x) have period 2 in x.
    m = jnp.floor(x * 0.5)
    r = (x - (m + m)) - 1.0                        # r in [-1, 1)
    u = r * r

    row = jax.lax.broadcasted_iota(jnp.int32, (two_b, 1), 0)
    is_sin = row < bit_depth                       # (2B, 1) row selector

    # Shared-u Horner; tiny per-row coefficient columns pick sin vs cos poly.
    p = jnp.where(is_sin, _SIN_COEF[-1], _COS_COEF[-1])
    for s_c, c_c in zip(_SIN_COEF[-2::-1], _COS_COEF[-2::-1]):
        p = p * u + jnp.where(is_sin, s_c, c_c)
    feat = p * jnp.where(is_sin, r, 1.0)           # rows <B: sin(pi x); rest: cos(pi x)

    if fuse_transpose:
        o_ref[...] = jnp.transpose(feat)           # (TN, 2B), XLU transpose
    else:
        o_ref[...] = feat                          # (2B, TN)


def _pallas_encode(c_row, k_col, bit_depth, tn, fuse_transpose):
    n = c_row.shape[1]
    two_b = 2 * bit_depth
    grid = (pl.cdiv(n, tn),)
    kernel = functools.partial(_bpe_kernel, bit_depth=bit_depth,
                               fuse_transpose=fuse_transpose)
    if fuse_transpose:
        out_shape = jax.ShapeDtypeStruct((n, two_b), jnp.float32)
        out_spec = pl.BlockSpec((tn, two_b), lambda i: (i, 0))
    else:
        out_shape = jax.ShapeDtypeStruct((two_b, n), jnp.float32)
        out_spec = pl.BlockSpec((two_b, tn), lambda i: (0, i))

    return pl.pallas_call(
        kernel,
        out_shape=out_shape,
        grid=grid,
        in_specs=[
            pl.BlockSpec((1, tn), lambda i: (0, i)),       # counts tile (lanes)
            pl.BlockSpec((two_b, 1), lambda i: (0, 0)),    # k column, resident
        ],
        out_specs=out_spec,
        compiler_params=pltpu.CompilerParams(
            dimension_semantics=("parallel",)),
        cost_estimate=pl.CostEstimate(
            flops=20 * two_b * n,
            transcendentals=0,
            bytes_accessed=4 * n * (two_b + 1)),
    )(c_row, k_col)


def _round_up(v, m):
    return ((v + m - 1) // m) * m


def binary_positional_encoding(counts: jax.Array,
                               bit_depth: int = 20,
                               tn: int = 4096) -> jax.Array:
    """JAX/Pallas equivalent of BinaryPositionalEncoding(bit_depth).forward(counts)."""
    orig_shape = counts.shape
    c_row = counts.reshape(1, -1).astype(jnp.float32)    # (1, n), counts on lanes
    n = c_row.shape[1]
    two_b = 2 * bit_depth

    # 2^-(j mod bit_depth) column: one row per output feature (exact in f32).
    k = 2.0 ** (-jnp.arange(bit_depth, dtype=jnp.float32))
    k_col = jnp.concatenate([k, k]).reshape(two_b, 1)

    # Lane tile: multiple of 128, clamped so the grid has >= 4 steps when n
    # allows (v7x megacore sharding + pipelining); never below one lane tile.
    cap = max(128, _round_up(pl.cdiv(n, 4), 128))
    tn = min(tn, cap)

    try:
        out2d = jax.block_until_ready(
            _pallas_encode(c_row, k_col, bit_depth, tn, fuse_transpose=True))
    except Exception:
        # Defensive fallback: if this toolchain rejects the in-kernel
        # (2B, TN) -> (TN, 2B) transpose, emit feature-major and let XLA
        # transpose (one extra HBM pass, still correct).
        out2d = _pallas_encode(c_row, k_col, bit_depth, tn,
                               fuse_transpose=False).T

    return out2d.reshape(*orig_shape, two_b)


def _reference(counts: jax.Array, bit_depth: int = 20) -> jax.Array:
    k = 2.0 ** (-jnp.arange(bit_depth, dtype=jnp.float32))
    scaled = counts.astype(jnp.float32)[..., None] * k
    return jnp.concatenate(
        [jnp.sin(math.pi * scaled), jnp.cos(math.pi * scaled)], axis=-1)


if __name__ == "__main__":
    bit_depth = 20
    key = jax.random.PRNGKey(0)

    # Photon-count-like input: (batch=2, channels=4, 16, 16) -> n = 2048 counts,
    # i.e. 4 grid steps with the clamped 512-lane tile.
    counts = jax.random.uniform(key, (2, 4, 16, 16), dtype=jnp.float32,
                                minval=0.0, maxval=1000.0)
    out = jax.block_until_ready(binary_positional_encoding(counts, bit_depth))
    ref = _reference(counts, bit_depth)
    assert out.shape == (2, 4, 16, 16, 2 * bit_depth), out.shape
    # The reference rounds pi*x before the sin; at counts ~1e3 that alone moves
    # the result by ~2e-4 (the kernel's exact mod-2 reduction is more accurate),
    # so 1e-3 is the right comparison scale.
    err = float(jnp.max(jnp.abs(out - ref)))
    assert err < 1e-3, err

    # Ragged case: n = 259 (not a multiple of the tile, 128, or 8).
    counts2 = jax.random.uniform(jax.random.PRNGKey(1), (7, 37),
                                 dtype=jnp.float32, minval=0.0, maxval=300.0)
    out2 = jax.block_until_ready(binary_positional_encoding(counts2, bit_depth))
    ref2 = _reference(counts2, bit_depth)
    assert out2.shape == (7, 37, 2 * bit_depth), out2.shape
    err2 = float(jnp.max(jnp.abs(out2 - ref2)))
    assert err2 < 1e-3, err2

    print("KERNEL_OK")
</pallas_src>

<mosaic_0001>
module attributes {stable_mosaic.version = 11 : i64} {
  func.func @_bpe_kernel(%arg0: i32, %arg1: memref<1x512xf32, #tpu.memory_space<vmem>>, %arg2: memref<40x1xf32, #tpu.memory_space<vmem>>, %arg3: memref<512x40xf32, #tpu.memory_space<vmem>>) attributes {dimension_semantics = [#tpu.dimension_semantics<parallel>], iteration_bounds = array<i64: 4>, scalar_prefetch = 0 : i64, scratch_operands = 0 : i64, tpu.core_type = #tpu.core_type<tc>, window_params = [{transform_indices = @transform_0, window_bounds = array<i64: 1, 512>}, {pipeline_mode = #tpu.pipeline_mode<synchronous>, transform_indices = @transform_1, window_bounds = array<i64: 40, 1>}, {transform_indices = @transform_2, window_bounds = array<i64: 512, 40>}]} {
    %c0 = arith.constant 0 : index
    %c0_0 = arith.constant 0 : index
    %0 = vector.load %arg2[%c0, %c0_0] : memref<40x1xf32, #tpu.memory_space<vmem>>, vector<40x1xf32>
    %c0_1 = arith.constant 0 : index
    %c0_2 = arith.constant 0 : index
    %1 = vector.load %arg1[%c0_1, %c0_2] : memref<1x512xf32, #tpu.memory_space<vmem>>, vector<1x512xf32>
    %2 = vector.broadcast %0 : vector<40x1xf32> to vector<40x512xf32>
    %3 = vector.broadcast %1 : vector<1x512xf32> to vector<40x512xf32>
    %4 = arith.mulf %2, %3 : vector<40x512xf32>
    %cst = arith.constant 5.000000e-01 : f32
    %5 = vector.broadcast %cst : f32 to vector<40x512xf32>
    %6 = arith.mulf %4, %5 : vector<40x512xf32>
    %7 = math.floor %6 : vector<40x512xf32>
    %8 = arith.addf %7, %7 : vector<40x512xf32>
    %9 = arith.subf %4, %8 : vector<40x512xf32>
    %cst_3 = arith.constant 1.000000e+00 : f32
    %10 = vector.broadcast %cst_3 : f32 to vector<40x512xf32>
    %11 = arith.subf %9, %10 : vector<40x512xf32>
    %12 = arith.mulf %11, %11 : vector<40x512xf32>
    %13 = tpu.iota {dimensions = array<i32: 0>} : vector<40x1xi32>
    %c20_i32 = arith.constant 20 : i32
    %14 = vector.broadcast %c20_i32 : i32 to vector<40x1xi32>
    %15 = arith.cmpi slt, %13, %14 : vector<40x1xi32>
    %cst_4 = arith.constant -3.95236828E-4 : f32
    %cst_5 = arith.constant -0.00159367826 : f32
    %16 = vector.broadcast %cst_4 : f32 to vector<40x1xf32>
    %17 = vector.broadcast %cst_5 : f32 to vector<40x1xf32>
    %18 = arith.select %15, %16, %17 : vector<40x1xi1>, vector<40x1xf32>
    %19 = vector.broadcast %18 : vector<40x1xf32> to vector<40x512xf32>
    %20 = arith.mulf %19, %12 : vector<40x512xf32>
    %cst_6 = arith.constant 0.00727518461 : f32
    %cst_7 = arith.constant 0.0253582858 : f32
    %21 = vector.broadcast %cst_6 : f32 to vector<40x1xf32>
    %22 = vector.broadcast %cst_7 : f32 to vector<40x1xf32>
    %23 = arith.select %15, %21, %22 : vector<40x1xi1>, vector<40x1xf32>
    %24 = vector.broadcast %23 : vector<40x1xf32> to vector<40x512xf32>
    %25 = arith.addf %20, %24 : vector<40x512xf32>
    %26 = arith.mulf %25, %12 : vector<40x512xf32>
    %cst_8 = arith.constant -0.0820817425 : f32
    %cst_9 = arith.constant -0.235029027 : f32
    %27 = vector.broadcast %cst_8 : f32 to vector<40x1xf32>
    %28 = vector.broadcast %cst_9 : f32 to vector<40x1xf32>
    %29 = arith.select %15, %27, %28 : vector<40x1xi1>, vector<40x1xf32>
    %30 = vector.broadcast %29 : vector<40x1xf32> to vector<40x512xf32>
    %31 = arith.addf %26, %30 : vector<40x512xf32>
    %32 = arith.mulf %31, %12 : vector<40x512xf32>
    %cst_10 = arith.constant 0.59924221 : f32
    %cst_11 = arith.constant 1.33515799 : f32
    %33 = vector.broadcast %cst_10 : f32 to vector<40x1xf32>
    %34 = vector.broadcast %cst_11 : f32 to vector<40x1xf32>
    %35 = arith.select %15, %33, %34 : vector<40x1xi1>, vector<40x1xf32>
    %36 = vector.broadcast %35 : vector<40x1xf32> to vector<40x512xf32>
    %37 = arith.addf %32, %36 : vector<40x512xf32>
    %38 = arith.mulf %37, %12 : vector<40x512xf32>
    %cst_12 = arith.constant -2.55016041 : f32
    %cst_13 = arith.constant -4.05869484 : f32
    %39 = vector.broadcast %cst_12 : f32 to vector<40x1xf32>
    %40 = vector.broadcast %cst_13 : f32 to vector<40x1xf32>
    %41 = arith.select %15, %39, %40 : vector<40x1xi1>, vector<40x1xf32>
    %42 = vector.broadcast %41 : vector<40x1xf32> to vector<40x512xf32>
    %43 = arith.addf %38, %42 : vector<40x512xf32>
    %44 = arith.mulf %43, %12 : vector<40x512xf32>
    %cst_14 = arith.constant 5.16771269 : f32
    %cst_15 = arith.constant 4.9348011 : f32
    %45 = vector.broadcast %cst_14 : f32 to vector<40x1xf32>
    %46 = vector.broadcast %cst_15 : f32 to vector<40x1xf32>
    %47 = arith.select %15, %45, %46 : vector<40x1xi1>, vector<40x1xf32>
    %48 = vector.broadcast %47 : vector<40x1xf32> to vector<40x512xf32>
    %49 = arith.addf %44, %48 : vector<40x512xf32>
    %50 = arith.mulf %49, %12 : vector<40x512xf32>
    %cst_16 = arith.constant -3.14159274 : f32
    %cst_17 = arith.constant -1.000000e+00 : f32
    %51 = vector.broadcast %cst_16 : f32 to vector<40x1xf32>
    %52 = vector.broadcast %cst_17 : f32 to vector<40x1xf32>
    %53 = arith.select %15, %51, %52 : vector<40x1xi1>, vector<40x1xf32>
    %54 = vector.broadcast %53 : vector<40x1xf32> to vector<40x512xf32>
    %55 = arith.addf %50, %54 : vector<40x512xf32>
    %cst_18 = arith.constant 1.000000e+00 : f32
    %56 = vector.shape_cast %15 : vector<40x1xi1> to vector<40x1xi1>
    %57 = vector.broadcast %56 : vector<40x1xi1> to vector<40x512xi1>
    %58 = vector.broadcast %cst_18 : f32 to vector<40x512xf32>
    %59 = arith.select %57, %11, %58 : vector<40x512xi1>, vector<40x512xf32>
    %60 = arith.mulf %55, %59 : vector<40x512xf32>
    %61 = tpu.transpose %60, [1, 0] : vector<40x512xf32> -> vector<512x40xf32>
    %c0_19 = arith.constant 0 : index
    %c0_20 = arith.constant 0 : index
    %62 = vector.load %arg3[%c0_19, %c0_20] : memref<512x40xf32, #tpu.memory_space<vmem>>, vector<512x40xf32>
    tpu.vector_store %arg3[%c0_19, %c0_20], %61 {strides = array<i32>} : memref<512x40xf32, #tpu.memory_space<vmem>>, vector<512x40xf32>,
    return
  }
  func.func @transform_0(%arg0: i32) -> (i32, i32) {
    %c0_i32 = arith.constant 0 : i32
    %c0_i32_0 = arith.constant 0 : i32
    return %c0_i32, %arg0 : i32, i32
  }
  func.func @transform_1(%arg0: i32) -> (i32, i32) {
    %c0_i32 = arith.constant 0 : i32
    %c0_i32_0 = arith.constant 0 : i32
    %c0_i32_1 = arith.constant 0 : i32
    return %c0_i32, %c0_i32_0 : i32, i32
  }
  func.func @transform_2(%arg0: i32) -> (i32, i32) {
    %c0_i32 = arith.constant 0 : i32
    %c0_i32_0 = arith.constant 0 : i32
    return %arg0, %c0_i32 : i32, i32
  }
}

module attributes {stable_mosaic.version = 11 : i64} {
  func.func @_bpe_kernel(%arg0: i32, %arg1: memref<1x512xf32, #tpu.memory_space<vmem>>, %arg2: memref<40x1xf32, #tpu.memory_space<vmem>>, %arg3: memref<40x512xf32, #tpu.memory_space<vmem>>) attributes {dimension_semantics = [#tpu.dimension_semantics<parallel>], iteration_bounds = array<i64: 4>, scalar_prefetch = 0 : i64, scratch_operands = 0 : i64, tpu.core_type = #tpu.core_type<tc>, window_params = [{transform_indices = @transform_0, window_bounds = array<i64: 1, 512>}, {pipeline_mode = #tpu.pipeline_mode<synchronous>, transform_indices = @transform_1, window_bounds = array<i64: 40, 1>}, {transform_indices = @transform_2, window_bounds = array<i64: 40, 512>}]} {
    %c0 = arith.constant 0 : index
    %c0_0 = arith.constant 0 : index
    %0 = vector.load %arg2[%c0, %c0_0] : memref<40x1xf32, #tpu.memory_space<vmem>>, vector<40x1xf32>
    %c0_1 = arith.constant 0 : index
    %c0_2 = arith.constant 0 : index
    %1 = vector.load %arg1[%c0_1, %c0_2] : memref<1x512xf32, #tpu.memory_space<vmem>>, vector<1x512xf32>
    %2 = vector.broadcast %0 : vector<40x1xf32> to vector<40x512xf32>
    %3 = vector.broadcast %1 : vector<1x512xf32> to vector<40x512xf32>
    %4 = arith.mulf %2, %3 : vector<40x512xf32>
    %cst = arith.constant 5.000000e-01 : f32
    %5 = vector.broadcast %cst : f32 to vector<40x512xf32>
    %6 = arith.mulf %4, %5 : vector<40x512xf32>
    %7 = math.floor %6 : vector<40x512xf32>
    %8 = arith.addf %7, %7 : vector<40x512xf32>
    %9 = arith.subf %4, %8 : vector<40x512xf32>
    %cst_3 = arith.constant 1.000000e+00 : f32
    %10 = vector.broadcast %cst_3 : f32 to vector<40x512xf32>
    %11 = arith.subf %9, %10 : vector<40x512xf32>
    %12 = arith.mulf %11, %11 : vector<40x512xf32>
    %13 = tpu.iota {dimensions = array<i32: 0>} : vector<40x1xi32>
    %c20_i32 = arith.constant 20 : i32
    %14 = vector.broadcast %c20_i32 : i32 to vector<40x1xi32>
    %15 = arith.cmpi slt, %13, %14 : vector<40x1xi32>
    %cst_4 = arith.constant -3.95236828E-4 : f32
    %cst_5 = arith.constant -0.00159367826 : f32
    %16 = vector.broadcast %cst_4 : f32 to vector<40x1xf32>
    %17 = vector.broadcast %cst_5 : f32 to vector<40x1xf32>
    %18 = arith.select %15, %16, %17 : vector<40x1xi1>, vector<40x1xf32>
    %19 = vector.broadcast %18 : vector<40x1xf32> to vector<40x512xf32>
    %20 = arith.mulf %19, %12 : vector<40x512xf32>
    %cst_6 = arith.constant 0.00727518461 : f32
    %cst_7 = arith.constant 0.0253582858 : f32
    %21 = vector.broadcast %cst_6 : f32 to vector<40x1xf32>
    %22 = vector.broadcast %cst_7 : f32 to vector<40x1xf32>
    %23 = arith.select %15, %21, %22 : vector<40x1xi1>, vector<40x1xf32>
    %24 = vector.broadcast %23 : vector<40x1xf32> to vector<40x512xf32>
    %25 = arith.addf %20, %24 : vector<40x512xf32>
    %26 = arith.mulf %25, %12 : vector<40x512xf32>
    %cst_8 = arith.constant -0.0820817425 : f32
    %cst_9 = arith.constant -0.235029027 : f32
    %27 = vector.broadcast %cst_8 : f32 to vector<40x1xf32>
    %28 = vector.broadcast %cst_9 : f32 to vector<40x1xf32>
    %29 = arith.select %15, %27, %28 : vector<40x1xi1>, vector<40x1xf32>
    %30 = vector.broadcast %29 : vector<40x1xf32> to vector<40x512xf32>
    %31 = arith.addf %26, %30 : vector<40x512xf32>
    %32 = arith.mulf %31, %12 : vector<40x512xf32>
    %cst_10 = arith.constant 0.59924221 : f32
    %cst_11 = arith.constant 1.33515799 : f32
    %33 = vector.broadcast %cst_10 : f32 to vector<40x1xf32>
    %34 = vector.broadcast %cst_11 : f32 to vector<40x1xf32>
    %35 = arith.select %15, %33, %34 : vector<40x1xi1>, vector<40x1xf32>
    %36 = vector.broadcast %35 : vector<40x1xf32> to vector<40x512xf32>
    %37 = arith.addf %32, %36 : vector<40x512xf32>
    %38 = arith.mulf %37, %12 : vector<40x512xf32>
    %cst_12 = arith.constant -2.55016041 : f32
    %cst_13 = arith.constant -4.05869484 : f32
    %39 = vector.broadcast %cst_12 : f32 to vector<40x1xf32>
    %40 = vector.broadcast %cst_13 : f32 to vector<40x1xf32>
    %41 = arith.select %15, %39, %40 : vector<40x1xi1>, vector<40x1xf32>
    %42 = vector.broadcast %41 : vector<40x1xf32> to vector<40x512xf32>
    %43 = arith.addf %38, %42 : vector<40x512xf32>
    %44 = arith.mulf %43, %12 : vector<40x512xf32>
    %cst_14 = arith.constant 5.16771269 : f32
    %cst_15 = arith.constant 4.9348011 : f32
    %45 = vector.broadcast %cst_14 : f32 to vector<40x1xf32>
    %46 = vector.broadcast %cst_15 : f32 to vector<40x1xf32>
    %47 = arith.select %15, %45, %46 : vector<40x1xi1>, vector<40x1xf32>
    %48 = vector.broadcast %47 : vector<40x1xf32> to vector<40x512xf32>
    %49 = arith.addf %44, %48 : vector<40x512xf32>
    %50 = arith.mulf %49, %12 : vector<40x512xf32>
    %cst_16 = arith.constant -3.14159274 : f32
    %cst_17 = arith.constant -1.000000e+00 : f32
    %51 = vector.broadcast %cst_16 : f32 to vector<40x1xf32>
    %52 = vector.broadcast %cst_17 : f32 to vector<40x1xf32>
    %53 = arith.select %15, %51, %52 : vector<40x1xi1>, vector<40x1xf32>
    %54 = vector.broadcast %53 : vector<40x1xf32> to vector<40x512xf32>
    %55 = arith.addf %50, %54 : vector<40x512xf32>
    %cst_18 = arith.constant 1.000000e+00 : f32
    %56 = vector.shape_cast %15 : vector<40x1xi1> to vector<40x1xi1>
    %57 = vector.broadcast %56 : vector<40x1xi1> to vector<40x512xi1>
    %58 = vector.broadcast %cst_18 : f32 to vector<40x512xf32>
    %59 = arith.select %57, %11, %58 : vector<40x512xi1>, vector<40x512xf32>
    %60 = arith.mulf %55, %59 : vector<40x512xf32>
    %c0_19 = arith.constant 0 : index
    %c0_20 = arith.constant 0 : index
    %61 = vector.load %arg3[%c0_19, %c0_20] : memref<40x512xf32, #tpu.memory_space<vmem>>, vector<40x512xf32>
    tpu.vector_store %arg3[%c0_19, %c0_20], %60 {strides = array<i32>} : memref<40x512xf32, #tpu.memory_space<vmem>>, vector<40x512xf32>,
    return
  }
  func.func @transform_0(%arg0: i32) -> (i32, i32) {
    %c0_i32 = arith.constant 0 : i32
    %c0_i32_0 = arith.constant 0 : i32
    return %c0_i32, %arg0 : i32, i32
  }
  func.func @transform_1(%arg0: i32) -> (i32, i32) {
    %c0_i32 = arith.constant 0 : i32
    %c0_i32_0 = arith.constant 0 : i32
    %c0_i32_1 = arith.constant 0 : i32
    return %c0_i32, %c0_i32_0 : i32, i32
  }
  func.func @transform_2(%arg0: i32) -> (i32, i32) {
    %c0_i32 = arith.constant 0 : i32
    %c0_i32_0 = arith.constant 0 : i32
    return %c0_i32, %arg0 : i32, i32
  }
}

</mosaic_0001>

<bundles_post_ra>
// kernel: tpu_custom_call.1
= control target key start
LH: loop header
LB: loop body
LE: loop exit
PB: predicated region body
PF: predicated region fallthrough
CT: control target
= control target key end

     0   :  { %s998_s9 = smov 0   ;;  %s1588_s0 = inlined_call_operand.vmem [shape: f32[1,2048], index: 0, kind: input, shape index: {}]   ;;  %s1589_s1 = inlined_call_operand.vmem [shape: f32[40,1], index: 1, kind: input, shape index: {}]   ;;  %s1590_s2 = inlined_call_operand.vmem [shape: f32[2048,40], index: 2, kind: output, shape index: {}]  }
   0x1 LB: > { %s918_s10 = sadd.s32 4294967295, %s973_s9   ;;  %p922_p0 = scmp.ge.s32.totalorder %s973_s9, 1  ;;  %s973_s9 = sphi %s998_s9, %s12_s9  }
   0x2   : > { %p112_p1 = scmp.lt.s32.totalorder %s973_s9, 5 }
   0x4   : > { %p113_p2 = pnand %p922_p0, %p112_p1 }
   0x5   : > { %v146_v0 = vld [vmem:[%s1589_s1 + $0x10] sm:$0xff] (!%p113_p2)  ;;  %v144_v1 = vld [vmem:[%s1589_s1] sm:$0xff] (!%p113_p2)  ;;  %v975_v2 = vmov (!%p113_p2), 0   ;;  %v147_v3 = vld [vmem:[%s1589_s1 + $0x18] sm:$0xff] (!%p113_p2)  ;;  %s923_s21 = sshll.u32 (!%p113_p2), %s918_s10, 2  ;;  %v176_v6 = vlaneseq (!%p113_p2)  ;;  %v982_v57 = vmov (!%p113_p2), -1.0  }
   0x6   : > { %116 = sbr.rel (%p113_p2) target bundleno = 441 (0x1b9), region = 28  ;;  %966 = vset.pattern.permute.xlu1 (!%p113_p2), %v975_v2  ;;  %965 = vset.pattern.permute.xlu0 (!%p113_p2), %v975_v2  ;;  %v145_v4 = vld [vmem:[%s1589_s1 + $0x8] sm:$0xff] (!%p113_p2)  ;;  %v148_v5 = vld [vmem:[%s1589_s1 + $0x20] sm:$0xff] (!%p113_p2)  ;;  %p134_p3 = scmp.lt.s32.totalorder (!%p113_p2), %s923_s21, 15  ;;  %v976_v31 = vmov (!%p113_p2), -0.0015936783  }
   0x7   : > { %162 = vperm.xlu1 (!%p113_p2), %966, %v146_v0   ;;  %152 = vperm.xlu0 (!%p113_p2), %965, %v144_v1   ;;  %v177_v7 = vshrl.u32 (!%p113_p2), %v176_v6, 7  ;;  %v977_v34 = vmov (!%p113_p2), 0.025358286   ;;  %v978_v38 = vmov (!%p113_p2), -0.23502903   ;;  %s924_s25 = sshll.u32 (!%p113_p2), %s918_s10, 6 }
   0x8   : > { %v979_v40 = vmov (!%p113_p2), 1.335158   ;;  %v980_v47 = vmov (!%p113_p2), -4.058695   ;;  %v981_v55 = vmov (!%p113_p2), 4.934801  }
   0x9   : > { %v178_v8 = vsub.s32 (!%p113_p2), 0, %v177_v7  ;;  %v182_v9 = vsub.s32 (!%p113_p2), 1, %v177_v7  ;;  %v1034_v17 = vadd.s32 (!%p113_p2), 16, %v177_v7  ;;  %v186_v21 = vsub.s32 (!%p113_p2), 2, %v177_v7  ;;  %p139_p4 = scmp.lt.s32.totalorder (!%p113_p2), %s924_s25, 255 }
   0xa   : > { %v190_v24 = vsub.s32 (!%p113_p2), 3, %v177_v7  ;;  %vm800_vm1 = vcmask (!%p113_p2), 326656  }
   0xb   : > { %167 = vperm.xlu1 (!%p113_p2), %966, %v147_v3   ;;  %157 = vperm.xlu0 (!%p113_p2), %965, %v145_v4   ;;  %vm344_vm0 = vcmp.lt.s32.totalorder (!%p113_p2), %v1034_v17, 20 }
   0xc   : > { %v1053_v32 = vsel (!%p113_p2), %vm344_vm0, -0.00039523683, %v976_v31  ;;  %v1059_v35 = vsel (!%p113_p2), %vm344_vm0, 0.0072751846, %v977_v34  ;;  %v1063_v39 = vsel (!%p113_p2), %vm344_vm0, -0.08208174, %v978_v38 }
   0xd   : > { %s1595_s21 = smov (!%p134_p3, %s923_s21), 15  ;;  %v1067_v41 = vsel %vm344_vm0, 0.5992422, %v979_v40  ;;  %v1078_v48 = vsel %vm344_vm0, -2.5501604, %v980_v47  ;;  %s1597_s25 = smov (!%p139_p4, %s924_s25), 255 }
   0xe   : > { %s136_s24 = scalar_lea.vmem %s1588_s0, %s1595_s21  ;;  %v1088_v56 = vsel %vm344_vm0, 5.1677127, %v981_v55  ;;  %v1092_v58 = vsel %vm344_vm0, -3.1415927, %v982_v57  ;;  %s925_s26 = sshll.u32 %s1597_s25, 3 }
   0xf   : > { %172 = vperm.xlu0 %965, %v148_v5   ;;  %v149_v10 = vld [vmem:[%s136_s24] sm:$0xf]  ;;  %s1455_s29 = scalar_lea.vmem %s1590_s2, %s925_s26 }
  0x10   : > { %v1026_v11 = vrot.slane %v149_v10, %v178_v8  ;;  %v1028_v12 = vrot.slane %v149_v10, %v182_v9  ;;  %v1045_v27 = vrot.slane %v149_v10, %v186_v21  ;;  %v1055_v33 = vrot.slane %v149_v10, %v190_v24 }
  0x86   : > { %v163_v13 = vpop.permute.xlu1 %162  ;;  %v153_v20 = vpop.permute.xlu0 %152 }
  0x87   : > { %v204_v14 = vmul.f32 %v1026_v11, %v163_v13  ;;  %v205_v15 = vmul.f32 %v1028_v12, %v163_v13  ;;  %v1074_v44 = vmul.f32 %v1045_v27, %v163_v13  ;;  %v1081_v49 = vmul.f32 %v1026_v11, %v153_v20 }
  0x88   : > { %v1084_v50 = vmul.f32 %v1028_v12, %v153_v20  ;;  %v1095_v59 = vmul.f32 %v1055_v33, %v163_v13  ;;  %v1098_v60 = vmul.f32 %v1045_v27, %v153_v20  ;;  %v1104_v1 = vmul.f32 %v1055_v33, %v153_v20 }
  0x89   : > { %v224_v18 = vmul.f32 0.5, %v204_v14  ;;  %v225_v19 = vmul.f32 0.5, %v205_v15  ;;  %v226_v0 = vmul.f32 0.5, %v1074_v44  ;;  %v216_v4 = vmul.f32 0.5, %v1081_v49 }
  0x8a   : > { %v1032_v16 = vpop.permute.xlu1 %167  ;;  %v1049_v30 = vpop.permute.xlu0 %157  ;;  %v217_v5 = vmul.f32 0.5, %v1084_v50  ;;  %v1125_v21 = vmul.f32 0.5, %v1104_v1 }
  0x8b   : > { %v1038_v22 = vmul.f32 %v1026_v11, %v1032_v16  ;;  %v1042_v23 = vmul.f32 %v1028_v12, %v1032_v16  ;;  %v244_v25 = vfloor.f32 %v224_v18  ;;  %v245_v26 = vfloor.f32 %v225_v19 }
  0x8c   : > { %v200_v42 = vmul.f32 %v1026_v11, %v1049_v30  ;;  %v201_v43 = vmul.f32 %v1028_v12, %v1049_v30  ;;  %v246_v20 = vfloor.f32 %v226_v0 }
  0x8d   : > { %v228_v28 = vmul.f32 0.5, %v1038_v22  ;;  %v229_v29 = vmul.f32 0.5, %v1042_v23  ;;  %v264_v36 = vadd.f32 %v244_v25, %v244_v25  ;;  %v265_v37 = vadd.f32 %v245_v26, %v245_v26 }
  0x8e   : > { %v220_v51 = vmul.f32 0.5, %v200_v42  ;;  %v221_v52 = vmul.f32 0.5, %v201_v43  ;;  %v1100_v63 = vpop.permute.xlu0 %172  ;;  %v236_v25 = vfloor.f32 %v216_v4  ;;  %v237_v26 = vfloor.f32 %v217_v5 }
  0x8f   : > { %v248_v45 = vfloor.f32 %v228_v28  ;;  %v249_v46 = vfloor.f32 %v229_v29  ;;  %v284_v53 = vsub.f32 %v204_v14, %v264_v36  ;;  %v285_v54 = vsub.f32 %v205_v15, %v265_v37 }
  0x90   : > { %v240_v61 = vfloor.f32 %v220_v51  ;;  %v241_v62 = vfloor.f32 %v221_v52  ;;  %v1114_v10 = vmul.f32 %v1026_v11, %v1100_v63  ;;  %v1118_v13 = vmul.f32 %v1028_v12, %v1100_v63 }
  0x91   : > { %v268_v2 = vadd.f32 %v248_v45, %v248_v45  ;;  %v269_v3 = vadd.f32 %v249_v46, %v249_v46  ;;  %v1108_v8 = vadd.f32 -1.0, %v284_v53  ;;  %v1110_v9 = vadd.f32 -1.0, %v285_v54 }
  0x92   : > { %v260_v6 = vadd.f32 %v240_v61, %v240_v61  ;;  %v261_v7 = vadd.f32 %v241_v62, %v241_v62  ;;  %v227_v14 = vmul.f32 0.5, %v1095_v59  ;;  %v1122_v15 = vmul.f32 0.5, %v1098_v60 }
  0x93   : > { %v288_v24 = vsub.f32 %v1038_v22, %v268_v2  ;;  %v289_v11 = vsub.f32 %v1042_v23, %v269_v3  ;;  %v1135_v29 = vmul.f32 %v1108_v8, %v1108_v8  ;;  %v1139_v31 = vmul.f32 %v1110_v9, %v1110_v9 }
  0x94   : > { %v280_v18 = vsub.f32 %v200_v42, %v260_v6  ;;  %v281_v19 = vsub.f32 %v201_v43, %v261_v7  ;;  %v232_v34 = vmul.f32 0.5, %v1114_v10  ;;  %v233_v22 = vmul.f32 0.5, %v1118_v13 }
  0x95   : > { %v247_v36 = vfloor.f32 %v227_v14  ;;  %v238_v23 = vfloor.f32 %v1122_v15  ;;  %v1152_v40 = vadd.f32 %v246_v20, %v246_v20  ;;  %v938_v43 = vadd.f32 -1.0, %v288_v24 }
  0x96   : > { %v1129_v28 = vadd.f32 -1.0, %v280_v18  ;;  %v1131_v12 = vadd.f32 -1.0, %v281_v19  ;;  %v939_v45 = vadd.f32 -1.0, %v289_v11  ;;  %v257_v46 = vadd.f32 %v237_v26, %v237_v26 }
  0x97   : > { %v256_v47 = vadd.f32 %v236_v25, %v236_v25  ;;  %v360_v53 = vmul.f32 %v1053_v32, %v1135_v29  ;;  %v361_v54 = vmul.f32 %v1053_v32, %v1139_v31  ;;  %v252_v55 = vfloor.f32 %v232_v34 }
  0x98   : > { %v1146_v37 = vmul.f32 %v1129_v28, %v1129_v28  ;;  %v1150_v38 = vmul.f32 %v1131_v12, %v1131_v12  ;;  %v253_v57 = vfloor.f32 %v233_v22  ;;  %v277_v61 = vsub.f32 %v1084_v50, %v257_v46 }
  0x99   : > { %v276_v62 = vsub.f32 %v1081_v49, %v256_v47  ;;  %v1163_v3 = vadd.f32 %v247_v36, %v247_v36  ;;  %v1165_v4 = vmul.f32 %v938_v43, %v938_v43  ;;  %v1167_v5 = vmul.f32 %v939_v45, %v939_v45 }
  0x9a   : > { %v357_v51 = vmul.f32 -0.00039523683, %v1150_v38  ;;  %v356_v52 = vmul.f32 -0.00039523683, %v1146_v37  ;;  %v1171_v6 = vmul.f32 %v1045_v27, %v1049_v30  ;;  %v1173_v7 = vadd.f32 -1.0, %v277_v61 }
  0x9b   : > { %v1175_v14 = vadd.f32 -1.0, %v276_v62  ;;  %v272_v18 = vadd.f32 %v252_v55, %v252_v55  ;;  %v273_v19 = vadd.f32 %v253_v57, %v253_v57  ;;  %v386_v20 = vadd.f32 %v1059_v35, %v361_v54 }
  0x9c   : > { %v382_v0 = vadd.f32 0.0072751846, %v357_v51  ;;  %v381_v2 = vadd.f32 0.0072751846, %v356_v52  ;;  %v385_v24 = vadd.f32 %v1059_v35, %v360_v53  ;;  %v1183_v11 = vmul.f32 %v1173_v7, %v1173_v7 }
  0x9d   : > { %v1187_v25 = vmul.f32 %v1175_v14, %v1175_v14  ;;  %v406_v22 = vmul.f32 %v386_v20, %v1139_v31  ;;  %v365_v43 = vmul.f32 -0.0015936783, %v1167_v5  ;;  %v364_v45 = vmul.f32 -0.0015936783, %v1165_v4 }
  0x9e   : > { %v402_v50 = vmul.f32 %v382_v0, %v1150_v38  ;;  %v401_v49 = vmul.f32 %v381_v2, %v1146_v37  ;;  %v405_v36 = vmul.f32 %v385_v24, %v1135_v29  ;;  %v353_v46 = vmul.f32 -0.00039523683, %v1183_v11 }
  0x9f   : > { %v352_v47 = vmul.f32 -0.00039523683, %v1187_v25  ;;  %v431_v53 = vadd.f32 %v1063_v39, %v406_v22  ;;  %v390_v55 = vadd.f32 0.025358286, %v365_v43  ;;  %v389_v57 = vadd.f32 0.025358286, %v364_v45 }
  0xa0   : > { %v427_v26 = vadd.f32 -0.08208174, %v402_v50  ;;  %v426_v34 = vadd.f32 -0.08208174, %v401_v49  ;;  %v430_v54 = vadd.f32 %v1063_v39, %v405_v36  ;;  %v292_v61 = vsub.f32 %v1114_v10, %v272_v18 }
  0xa1   : > { %v378_v62 = vadd.f32 0.0072751846, %v353_v46  ;;  %v377_v0 = vadd.f32 0.0072751846, %v352_v47  ;;  %v451_v49 = vmul.f32 %v431_v53, %v1139_v31  ;;  %v410_v24 = vmul.f32 %v390_v55, %v1167_v5 }
  0xa2   : > { %v447_v51 = vmul.f32 %v427_v26, %v1150_v38  ;;  %v446_v52 = vmul.f32 %v426_v34, %v1146_v37  ;;  %v450_v20 = vmul.f32 %v430_v54, %v1135_v29  ;;  %v409_v36 = vmul.f32 %v389_v57, %v1165_v4 }
  0xa3   : > { %v398_v26 = vmul.f32 %v378_v62, %v1183_v11  ;;  %v397_v34 = vmul.f32 %v377_v0, %v1187_v25  ;;  %v476_v18 = vadd.f32 %v1067_v41, %v451_v49  ;;  %v435_v45 = vadd.f32 -0.23502903, %v410_v24 }
  0xa4   : > { %v472_v2 = vadd.f32 0.5992422, %v447_v51  ;;  %v471_v50 = vadd.f32 0.5992422, %v446_v52  ;;  %v475_v43 = vadd.f32 %v1067_v41, %v450_v20  ;;  %v293_v46 = vsub.f32 %v1118_v13, %v273_v19 }
  0xa5   : > { %v423_v47 = vadd.f32 -0.08208174, %v398_v26  ;;  %v422_v51 = vadd.f32 -0.08208174, %v397_v34  ;;  %v496_v54 = vmul.f32 %v476_v18, %v1139_v31  ;;  %v455_v62 = vmul.f32 %v435_v45, %v1167_v5 }
  0xa6   : > { %v492_v22 = vmul.f32 %v472_v2, %v1150_v38  ;;  %v491_v10 = vmul.f32 %v471_v50, %v1146_v37  ;;  %v495_v55 = vmul.f32 %v475_v43, %v1135_v29  ;;  %v1216_v57 = vmul.f32 %v1045_v27, %v1032_v16 }
  0xa7   : > { %v443_v0 = vmul.f32 %v423_v47, %v1183_v11  ;;  %v442_v2 = vmul.f32 %v422_v51, %v1187_v25  ;;  %v434_v50 = vadd.f32 -0.23502903, %v409_v36  ;;  %v1222_v13 = vmul.f32 %v1055_v33, %v1049_v30 }
  0xa8   : > { %v517_v52 = vadd.f32 -2.5501604, %v492_v22  ;;  %v516_v53 = vadd.f32 -2.5501604, %v491_v10  ;;  %v222_v19 = vmul.f32 0.5, %v1171_v6  ;;  %v943_v24 = vadd.f32 -1.0, %v293_v46 }
  0xa9   : > { %v468_v26 = vadd.f32 0.5992422, %v443_v0  ;;  %v467_v34 = vadd.f32 0.5992422, %v442_v2  ;;  %v454_v22 = vmul.f32 %v434_v50, %v1165_v4  ;;  %v942_v10 = vadd.f32 -1.0, %v292_v61 }
  0xaa   : > { %v537_v49 = vmul.f32 %v517_v52, %v1150_v38  ;;  %v536_v20 = vmul.f32 %v516_v53, %v1146_v37  ;;  %v521_v18 = vadd.f32 %v1078_v48, %v496_v54  ;;  %v520_v36 = vadd.f32 %v1078_v48, %v495_v55 }
  0xab   : > { %v480_v43 = vadd.f32 1.335158, %v455_v62  ;;  %v1232_v30 = vmul.f32 %v1055_v33, %v1032_v16  ;;  %v488_v45 = vmul.f32 %v468_v26, %v1183_v11  ;;  %v487_v47 = vmul.f32 %v467_v34, %v1187_v25 }
  0xac   : > { %v479_v51 = vadd.f32 1.335158, %v454_v22  ;;  %v223_v52 = vmul.f32 0.5, %v1222_v13  ;;  %v562_v61 = vadd.f32 5.1677127, %v537_v49  ;;  %v242_v54 = vfloor.f32 %v222_v19 }
  0xad   : > { %v561_v53 = vadd.f32 5.1677127, %v536_v20  ;;  %v1239_v0 = vmul.f32 %v943_v24, %v943_v24  ;;  %v513_v55 = vadd.f32 -2.5501604, %v488_v45  ;;  %v512_v62 = vadd.f32 -2.5501604, %v487_v47 }
  0xae   : > { %v1241_v2 = vmul.f32 %v942_v10, %v942_v10  ;;  %v541_v16 = vmul.f32 %v521_v18, %v1139_v31  ;;  %v540_v50 = vmul.f32 %v520_v36, %v1135_v29  ;;  %v500_v26 = vmul.f32 %v480_v43, %v1167_v5 }
  0xaf   : > { %v533_v22 = vmul.f32 %v513_v55, %v1183_v11  ;;  %v532_v49 = vmul.f32 %v512_v62, %v1187_v25  ;;  %v499_v19 = vmul.f32 %v479_v51, %v1165_v4  ;;  %v1252_v20 = vmul.f32 0.5, %v1216_v57 }
  0xb0   : > { %v243_v24 = vfloor.f32 %v223_v52  ;;  %v582_v10 = vmul.f32 %v562_v61, %v1150_v38  ;;  %v581_v18 = vmul.f32 %v561_v53, %v1146_v37  ;;  %v262_v36 = vadd.f32 %v242_v54, %v242_v54 }
  0xb1   : > { %v558_v45 = vadd.f32 5.1677127, %v533_v22  ;;  %v557_v43 = vadd.f32 5.1677127, %v532_v49  ;;  %v369_v47 = vmul.f32 -0.0015936783, %v1239_v0  ;;  %v566_v34 = vadd.f32 %v1088_v56, %v541_v16 }
  0xb2   : > { %v565_v55 = vadd.f32 %v1088_v56, %v540_v50  ;;  %v525_v62 = vadd.f32 -4.058695, %v500_v26  ;;  %v368_v51 = vmul.f32 -0.0015936783, %v1241_v2  ;;  %v524_v42 = vadd.f32 -4.058695, %v499_v19 }
  0xb3   : > { %v578_v46 = vmul.f32 %v558_v45, %v1183_v11  ;;  %v577_v52 = vmul.f32 %v557_v43, %v1187_v25  ;;  %v394_v38 = vadd.f32 0.025358286, %v369_v47  ;;  %v607_v61 = vadd.f32 -3.1415927, %v582_v10 }
  0xb4   : > { %v606_v37 = vadd.f32 -3.1415927, %v581_v18  ;;  %v393_v53 = vadd.f32 0.025358286, %v368_v51  ;;  %v258_v54 = vadd.f32 %v238_v23, %v238_v23  ;;  %v1591_v26 = vfloor.f32 %v1125_v21 }
  0xb5   : > { %v603_v22 = vadd.f32 -3.1415927, %v578_v46  ;;  %v602_v16 = vadd.f32 -3.1415927, %v577_v52  ;;  %v414_v50 = vmul.f32 %v394_v38, %v1239_v0  ;;  %v586_v11 = vmul.f32 %v566_v34, %v1139_v31 }
  0xb6   : > { %v259_v49 = vadd.f32 %v1591_v26, %v1591_v26  ;;  %v585_v25 = vmul.f32 %v565_v55, %v1135_v29  ;;  %v545_v19 = vmul.f32 %v525_v62, %v1167_v5  ;;  %v413_v10 = vmul.f32 %v393_v53, %v1241_v2 }
  0xb7   : > { %v653_v15 = vmul.f32 %v1173_v7, %v603_v22  ;;  %v652_v23 = vmul.f32 %v1175_v14, %v602_v16  ;;  %v544_v46 = vmul.f32 %v524_v42, %v1165_v4  ;;  %v439_v18 = vadd.f32 -0.23502903, %v414_v50 }
  0xb8   : > { %v263_v45 = vadd.f32 %v243_v24, %v243_v24  ;;  %v657_v21 = vmul.f32 %v1131_v12, %v607_v61  ;;  %v438_v43 = vadd.f32 -0.23502903, %v413_v10  ;;  %v278_v47 = vsub.f32 %v1098_v60, %v258_v54 }
  0xb9   : > { %v231_v31 = vmul.f32 0.5, %v1232_v30  ;;  %704 = vxpose.xlu0.b32.start [1/5] (short) %v653_v15, 128  ;;  %672 = vxpose.xlu1.b32.start [1/5] (short) %v652_v23, 128  ;;  %v656_v29 = vmul.f32 %v1129_v28, %v606_v37  ;;  %v459_v34 = vmul.f32 %v439_v18, %v1239_v0  ;;  %v279_v7 = vsub.f32 %v1104_v1, %v259_v49 }
  0xba   : > { %v250_v14 = vfloor.f32 %v1252_v20  ;;  %v282_v42 = vsub.f32 %v1171_v6, %v262_v36  ;;  %v611_v24 = vadd.f32 %v1092_v58, %v586_v11  ;;  %v458_v12 = vmul.f32 %v438_v43, %v1241_v2 }
  0xbb   : > { %v610_v60 = vadd.f32 %v1092_v58, %v585_v25  ;;  %v570_v55 = vadd.f32 4.934801, %v545_v19  ;;  %v569_v62 = vadd.f32 4.934801, %v544_v46  ;;  %v484_v51 = vadd.f32 1.335158, %v459_v34 }
  0xbc   : > { %v1289_v28 = vmul.f32 %v1045_v27, %v1100_v63  ;;  %v1293_v1 = vmul.f32 %v1055_v33, %v1100_v63  ;;  %v483_v20 = vadd.f32 1.335158, %v458_v12  ;;  %v1295_v52 = vadd.f32 -1.0, %v278_v47 }
  0xbd   : > { %v283_v6 = vsub.f32 %v1222_v13, %v263_v45  ;;  %705 = vxpose.xlu0.b32.cont [2/5] (short) %v657_v21, 128  ;;  %673 = vxpose.xlu1.b32.cont [2/5] (short) %v656_v29, 128  ;;  %v641_v36 = vsel %vm344_vm0, %v1110_v9, 1.0  ;;  %v504_v38 = vmul.f32 %v484_v51, %v1239_v0  ;;  %v1302_v61 = vadd.f32 -1.0, %v279_v7 }
  0xbe   : > { %v1304_v27 = vadd.f32 -1.0, %v282_v42  ;;  %v661_v37 = vmul.f32 %v641_v36, %v611_v24  ;;  %v640_v33 = vsel %vm344_vm0, %v1108_v8, 1.0  ;;  %v503_v63 = vmul.f32 %v483_v20, %v1241_v2 }
  0xbf   : > { %v660_v13 = vmul.f32 %v640_v33, %v610_v60  ;;  %v590_v53 = vmul.f32 %v570_v55, %v1167_v5  ;;  %v589_v54 = vmul.f32 %v569_v62, %v1165_v4  ;;  %v529_v22 = vadd.f32 -4.058695, %v504_v38 }
  0xc0   : > { %v251_v9 = vfloor.f32 %v231_v31  ;;  %v234_v16 = vmul.f32 0.5, %v1289_v28  ;;  %v528_v50 = vadd.f32 -4.058695, %v503_v63  ;;  %v1315_v26 = vmul.f32 %v1295_v52, %v1295_v52 }
  0xc1   : > { %v1317_v49 = vadd.f32 -1.0, %v283_v6  ;;  %v235_v8 = vmul.f32 0.5, %v1293_v1  ;;  %706 = vxpose.xlu0.b32.cont [3/5] (short) %v661_v37, 128  ;;  %674 = vxpose.xlu1.b32.cont [3/5] (short) %v660_v13, 128  ;;  %v549_v11 = vmul.f32 %v529_v22, %v1239_v0  ;;  %v1323_v4 = vmul.f32 %v1302_v61, %v1302_v61 }
  0xc2   : > { %v1592_v5 = vsub.f32 %v1074_v44, %v1152_v40  ;;  %v1593_v19 = vsub.f32 %v1095_v59, %v1163_v3  ;;  %v270_v15 = vadd.f32 %v250_v14, %v250_v14  ;;  %v548_v23 = vmul.f32 %v528_v50, %v1241_v2 }
  0xc3   : > { %v1338_v46 = vmul.f32 %v1304_v27, %v1304_v27  ;;  %v615_v18 = vadd.f32 -1.0, %v590_v53  ;;  %v614_v45 = vadd.f32 -1.0, %v589_v54  ;;  %v574_v21 = vadd.f32 4.934801, %v549_v11 }
  0xc4   : > { %v1328_v25 = vadd.f32 -1.0, %v1592_v5  ;;  %v1333_v10 = vadd.f32 -1.0, %v1593_v19  ;;  %v271_v43 = vadd.f32 %v251_v9, %v251_v9  ;;  %v254_v47 = vfloor.f32 %v234_v16 }
  0xc5   : > { %v573_v44 = vadd.f32 4.934801, %v548_v23  ;;  %v354_v40 = vmul.f32 -0.00039523683, %v1315_v26  ;;  %v1343_v59 = vmul.f32 %v1317_v49, %v1317_v49  ;;  %v255_v3 = vfloor.f32 %v235_v8  ;;  %707 = vxpose.xlu0.b32.cont [4/5] (short) %v615_v18, 128  ;;  %675 = vxpose.xlu1.b32.cont [4/5] (short) %v614_v45, 128 }
  0xc6   : > { %v594_v31 = vmul.f32 %v574_v21, %v1239_v0  ;;  %v355_v29 = vmul.f32 -0.00039523683, %v1323_v4  ;;  %v1350_v7 = vmul.f32 %v1328_v25, %v1328_v25  ;;  %v1354_v14 = vmul.f32 %v1333_v10, %v1333_v10 }
  0xc7   : > { %v593_v34 = vmul.f32 %v573_v44, %v1241_v2  ;;  %v358_v24 = vmul.f32 -0.00039523683, %v1338_v46  ;;  %v290_v12 = vsub.f32 %v1216_v57, %v270_v15  ;;  %v274_v60 = vadd.f32 %v254_v47, %v254_v47 }
  0xc8   : > { %v619_v42 = vadd.f32 -1.0, %v594_v31  ;;  %v379_v0 = vadd.f32 0.0072751846, %v354_v40  ;;  %v291_v62 = vsub.f32 %v1232_v30, %v271_v43  ;;  %v275_v51 = vadd.f32 %v255_v3, %v255_v3 }
  0xc9   : > { %v618_v55 = vadd.f32 -1.0, %v593_v34  ;;  %v380_v2 = vadd.f32 0.0072751846, %v355_v29  ;;  %v359_v20 = vmul.f32 -0.00039523683, %v1343_v59  ;;  %v362_v6 = vmul.f32 %v1053_v32, %v1350_v7 }
  0xca   : > { %708 = vxpose.xlu0.b32.end [5/5] (short) %v619_v42, 128  ;;  %v383_v36 = vadd.f32 0.0072751846, %v358_v24  ;;  %v363_v38 = vmul.f32 %v1053_v32, %v1354_v14  ;;  %v940_v37 = vadd.f32 -1.0, %v290_v12  ;;  %v294_v57 = vsub.f32 %v1289_v28, %v274_v60 }
  0xcb   : > { %676 = vxpose.xlu1.b32.end [5/5] (short) %v618_v55, 128  ;;  %v399_v33 = vmul.f32 %v379_v0, %v1315_v26  ;;  %v941_v63 = vadd.f32 -1.0, %v291_v62  ;;  %v295_v30 = vsub.f32 %v1293_v1, %v275_v51  ;;  %v400_v13 = vmul.f32 %v380_v2, %v1323_v4 }
  0xcc   : > { %v384_v53 = vadd.f32 0.0072751846, %v359_v20  ;;  %v403_v54 = vmul.f32 %v383_v36, %v1338_v46  ;;  %v387_v22 = vadd.f32 %v1059_v35, %v362_v6  ;;  %v1370_v9 = vmul.f32 %v940_v37, %v940_v37 }
  0xcd   : > { %v944_v16 = vadd.f32 -1.0, %v294_v57  ;;  %v424_v50 = vadd.f32 -0.08208174, %v399_v33  ;;  %v388_v32 = vadd.f32 %v1059_v35, %v363_v38  ;;  %v1373_v8 = vmul.f32 %v941_v63, %v941_v63 }
  0xce   : > { %v945_v28 = vadd.f32 -1.0, %v295_v30  ;;  %v425_v11 = vadd.f32 -0.08208174, %v400_v13  ;;  %v404_v5 = vmul.f32 %v384_v53, %v1343_v59  ;;  %v428_v1 = vadd.f32 -0.08208174, %v403_v54 }
  0xcf   : > { %v407_v19 = vmul.f32 %v387_v22, %v1350_v7  ;;  %v1377_v15 = vmul.f32 %v944_v16, %v944_v16  ;;  %v444_v23 = vmul.f32 %v424_v50, %v1315_v26  ;;  %v408_v18 = vmul.f32 %v388_v32, %v1354_v14 }
  0xd0   : > { %v366_v45 = vmul.f32 -0.0015936783, %v1370_v9  ;;  %v1382_v21 = vmul.f32 %v945_v28, %v945_v28  ;;  %v445_v35 = vmul.f32 %v425_v11, %v1323_v4  ;;  %v429_v43 = vadd.f32 -0.08208174, %v404_v5 }
  0xd1   : > { %v367_v47 = vmul.f32 -0.0015936783, %v1373_v8  ;;  %v448_v44 = vmul.f32 %v428_v1, %v1338_v46  ;;  %v432_v40 = vadd.f32 %v1063_v39, %v407_v19  ;;  %v469_v3 = vadd.f32 0.5992422, %v444_v23 }
  0xd2   : > { %v433_v31 = vadd.f32 %v1063_v39, %v408_v18  ;;  %v391_v29 = vadd.f32 0.025358286, %v366_v45  ;;  %v370_v34 = vmul.f32 -0.0015936783, %v1377_v15  ;;  %v470_v42 = vadd.f32 0.5992422, %v445_v35 }
  0xd3   : > { %v449_v24 = vmul.f32 %v429_v43, %v1343_v59  ;;  %v392_v12 = vadd.f32 0.025358286, %v367_v47  ;;  %v371_v60 = vmul.f32 -0.0015936783, %v1382_v21  ;;  %v473_v55 = vadd.f32 0.5992422, %v448_v44 }
  0xd4   : > { %v452_v0 = vmul.f32 %v432_v40, %v1350_v7  ;;  %v489_v62 = vmul.f32 %v469_v3, %v1315_v26  ;;  %v453_v51 = vmul.f32 %v433_v31, %v1354_v14  ;;  %v411_v2 = vmul.f32 %v391_v29, %v1370_v9 }
  0xd5   : > { %v395_v20 = vadd.f32 0.025358286, %v370_v34  ;;  %v490_v39 = vmul.f32 %v470_v42, %v1323_v4  ;;  %v474_v6 = vadd.f32 0.5992422, %v449_v24  ;;  %v412_v36 = vmul.f32 %v392_v12, %v1373_v8 }
  0xd6   : > { %v396_v38 = vadd.f32 0.025358286, %v371_v60  ;;  %v493_v37 = vmul.f32 %v473_v55, %v1338_v46  ;;  %v477_v57 = vadd.f32 %v1067_v41, %v452_v0  ;;  %v514_v33 = vadd.f32 -2.5501604, %v489_v62 }
  0xd7   : > { %v478_v63 = vadd.f32 %v1067_v41, %v453_v51  ;;  %v436_v30 = vadd.f32 -0.23502903, %v411_v2  ;;  %v415_v13 = vmul.f32 %v395_v20, %v1377_v15  ;;  %v515_v53 = vadd.f32 -2.5501604, %v490_v39 }
  0xd8   : > { %v494_v54 = vmul.f32 %v474_v6, %v1343_v59  ;;  %v437_v22 = vadd.f32 -0.23502903, %v412_v36  ;;  %v416_v16 = vmul.f32 %v396_v38, %v1382_v21  ;;  %v518_v50 = vadd.f32 -2.5501604, %v493_v37 }
  0xd9   : > { %v497_v32 = vmul.f32 %v477_v57, %v1350_v7  ;;  %v534_v28 = vmul.f32 %v514_v33, %v1315_v26  ;;  %v498_v11 = vmul.f32 %v478_v63, %v1354_v14  ;;  %v456_v5 = vmul.f32 %v436_v30, %v1370_v9 }
  0xda   : > { %v440_v1 = vadd.f32 -0.23502903, %v415_v13  ;;  %v535_v41 = vmul.f32 %v515_v53, %v1323_v4  ;;  %v519_v19 = vadd.f32 -2.5501604, %v494_v54  ;;  %v457_v23 = vmul.f32 %v437_v22, %v1373_v8 }
  0xdb   : > { %v441_v18 = vadd.f32 -0.23502903, %v416_v16  ;;  %v538_v45 = vmul.f32 %v518_v50, %v1338_v46  ;;  %v522_v35 = vadd.f32 %v1078_v48, %v497_v32  ;;  %v559_v43 = vadd.f32 5.1677127, %v534_v28 }
  0xdc   : > { %v523_v47 = vadd.f32 %v1078_v48, %v498_v11  ;;  %v481_v44 = vadd.f32 1.335158, %v456_v5  ;;  %v460_v40 = vmul.f32 %v440_v1, %v1377_v15  ;;  %v560_v3 = vadd.f32 5.1677127, %v535_v41 }
  0xdd   : > { %v539_v31 = vmul.f32 %v519_v19, %v1343_v59  ;;  %v482_v29 = vadd.f32 1.335158, %v457_v23  ;;  %v461_v34 = vmul.f32 %v441_v18, %v1382_v21  ;;  %v563_v42 = vadd.f32 5.1677127, %v538_v45 }
  0xde   : > { %v542_v24 = vmul.f32 %v522_v35, %v1350_v7  ;;  %v579_v12 = vmul.f32 %v559_v43, %v1315_v26  ;;  %v543_v60 = vmul.f32 %v523_v47, %v1354_v14  ;;  %v501_v55 = vmul.f32 %v481_v44, %v1370_v9 }
  0xdf   : > { %v485_v0 = vadd.f32 1.335158, %v460_v40  ;;  %v580_v48 = vmul.f32 %v560_v3, %v1323_v4  ;;  %v564_v62 = vadd.f32 5.1677127, %v539_v31  ;;  %v502_v51 = vmul.f32 %v482_v29, %v1373_v8 }
  0xe0   : > { %v486_v2 = vadd.f32 1.335158, %v461_v34  ;;  %v583_v20 = vmul.f32 %v563_v42, %v1338_v46  ;;  %v567_v39 = vadd.f32 %v1088_v56, %v542_v24  ;;  %v604_v6 = vadd.f32 -3.1415927, %v579_v12 }
  0xe1   : > { %v568_v36 = vadd.f32 %v1088_v56, %v543_v60  ;;  %v526_v38 = vadd.f32 -4.058695, %v501_v55  ;;  %v505_v26 = vmul.f32 %v485_v0, %v1377_v15  ;;  %v605_v37 = vadd.f32 -3.1415927, %v580_v48 }
  0xe2   : > { %v584_v57 = vmul.f32 %v564_v62, %v1343_v59  ;;  %v527_v33 = vadd.f32 -4.058695, %v502_v51  ;;  %v506_v4 = vmul.f32 %v486_v2, %v1382_v21  ;;  %v608_v63 = vadd.f32 -3.1415927, %v583_v20 }
  0xe3   : > { %v587_v30 = vmul.f32 %v567_v39, %v1350_v7  ;;  %v654_v13 = vmul.f32 %v1295_v52, %v604_v6  ;;  %v588_v46 = vmul.f32 %v568_v36, %v1354_v14  ;;  %v546_v53 = vmul.f32 %v526_v38, %v1370_v9 }
  0xe4   : > { %v530_v54 = vadd.f32 -4.058695, %v505_v26  ;;  %v655_v56 = vmul.f32 %v1302_v61, %v605_v37  ;;  %v609_v22 = vadd.f32 -3.1415927, %v584_v57  ;;  %v547_v16 = vmul.f32 %v527_v33, %v1373_v8 }
  0xe5   : > { %v531_v50 = vadd.f32 -4.058695, %v506_v4  ;;  %v658_v59 = vmul.f32 %v1304_v27, %v608_v63  ;;  %v612_v32 = vadd.f32 %v1092_v58, %v587_v30  ;;  %v571_v7 = vadd.f32 4.934801, %v546_v53 }
  0xe6   : > { %v550_v52 = vmul.f32 %v530_v54, %v1377_v15  ;;  %v659_v14 = vmul.f32 %v1317_v49, %v609_v22  ;;  %v613_v28 = vadd.f32 %v1092_v58, %v588_v46  ;;  %v572_v11 = vadd.f32 4.934801, %v547_v16 }
  0xe7   : > { %v551_v61 = vmul.f32 %v531_v50, %v1382_v21  ;;  %v642_v5 = vsel %vm344_vm0, %v1328_v25, 1.0  ;;  %v643_v27 = vsel %vm344_vm0, %v1333_v10, 1.0  ;;  %v591_v41 = vmul.f32 %v571_v7, %v1370_v9 }
  0xe8   : > { %v662_v1 = vmul.f32 %v642_v5, %v612_v32  ;;  %v575_v19 = vadd.f32 4.934801, %v550_v52  ;;  %v663_v49 = vmul.f32 %v643_v27, %v613_v28  ;;  %v592_v58 = vmul.f32 %v572_v11, %v1373_v8 }
  0xe9   : > { %v576_v23 = vadd.f32 4.934801, %v551_v61  ;;  %v616_v18 = vadd.f32 -1.0, %v591_v41 }
  0xea   : > { %v595_v45 = vmul.f32 %v575_v19, %v1377_v15  ;;  %v617_v35 = vadd.f32 -1.0, %v592_v58 }
  0xeb   : > { %v596_v25 = vmul.f32 %v576_v23, %v1382_v21 }
  0xec   : > { %v620_v17 = vadd.f32 -1.0, %v595_v45 }
  0xed   : > { %v621_v10 = vadd.f32 -1.0, %v596_v25 }
  0xf7   : > { %736 = vxpose.xlu0.b32.start [1/5] (short) %v654_v13, 128 }
  0xf8   : > { %768 = vxpose.xlu1.b32.start [1/5] (short) %v655_v56, 128 }
  0xfb   : > { %737 = vxpose.xlu0.b32.cont [2/5] (short) %v658_v59, 128 }
  0xfc   : > { %769 = vxpose.xlu1.b32.cont [2/5] (short) %v659_v14, 128 }
  0xff   : > { %738 = vxpose.xlu0.b32.cont [3/5] (short) %v662_v1, 128 }
 0x100   : > { %770 = vxpose.xlu1.b32.cont [3/5] (short) %v663_v49, 128 }
 0x103   : > { %739 = vxpose.xlu0.b32.cont [4/5] (short) %v616_v18, 128 }
 0x104   : > { %771 = vxpose.xlu1.b32.cont [4/5] (short) %v617_v35, 128 }
 0x107   : > { %740 = vxpose.xlu0.b32.end [5/5] (short) %v620_v17, 128 }
 0x108   : > { %772 = vxpose.xlu1.b32.end [5/5] (short) %v621_v10, 128 }
 0x13a   : > { %v720_v9 = vpop.trf.xlu0 }
 0x13b   : > { %817 = vst.msk [vmem:[%s1455_s29 + $0x80] sm:$0xff] %vm800_vm1, %v720_v9  ;;  %v688_v8 = vpop.trf.xlu1 }
 0x13c   : > { %801 = vst.msk [vmem:[%s1455_s29] sm:$0xff] %vm800_vm1, %v688_v8 }
 0x13e   : > { %v721_v15 = vpop.trf.xlu0 }
 0x13f   : > { %818 = vst.msk [vmem:[%s1455_s29 + $0x88] sm:$0xff] %vm800_vm1, %v721_v15  ;;  %v689_v21 = vpop.trf.xlu1 }
 0x140   : > { %802 = vst.msk [vmem:[%s1455_s29 + $0x8] sm:$0xff] %vm800_vm1, %v689_v21 }
 0x142   : > { %v722_v43 = vpop.trf.xlu0 }
 0x143   : > { %819 = vst.msk [vmem:[%s1455_s29 + $0x90] sm:$0xff] %vm800_vm1, %v722_v43  ;;  %v690_v47 = vpop.trf.xlu1 }
 0x144   : > { %803 = vst.msk [vmem:[%s1455_s29 + $0x10] sm:$0xff] %vm800_vm1, %v690_v47 }
 0x146   : > { %v723_v44 = vpop.trf.xlu0 }
 0x147   : > { %820 = vst.msk [vmem:[%s1455_s29 + $0x98] sm:$0xff] %vm800_vm1, %v723_v44  ;;  %v691_v40 = vpop.trf.xlu1 }
 0x148   : > { %804 = vst.msk [vmem:[%s1455_s29 + $0x18] sm:$0xff] %vm800_vm1, %v691_v40 }
 0x14a   : > { %v724_v3 = vpop.trf.xlu0 }
 0x14b   : > { %821 = vst.msk [vmem:[%s1455_s29 + $0xa0] sm:$0xff] %vm800_vm1, %v724_v3  ;;  %v692_v31 = vpop.trf.xlu1 }
 0x14c   : > { %805 = vst.msk [vmem:[%s1455_s29 + $0x20] sm:$0xff] %vm800_vm1, %v692_v31 }
 0x14e   : > { %v725_v29 = vpop.trf.xlu0 }
 0x14f   : > { %822 = vst.msk [vmem:[%s1455_s29 + $0xa8] sm:$0xff] %vm800_vm1, %v725_v29  ;;  %v693_v34 = vpop.trf.xlu1 }
 0x150   : > { %806 = vst.msk [vmem:[%s1455_s29 + $0x28] sm:$0xff] %vm800_vm1, %v693_v34 }
 0x152   : > { %v726_v42 = vpop.trf.xlu0 }
 0x153   : > { %823 = vst.msk [vmem:[%s1455_s29 + $0xb0] sm:$0xff] %vm800_vm1, %v726_v42  ;;  %v694_v24 = vpop.trf.xlu1 }
 0x154   : > { %807 = vst.msk [vmem:[%s1455_s29 + $0x30] sm:$0xff] %vm800_vm1, %v694_v24 }
 0x156   : > { %v727_v12 = vpop.trf.xlu0 }
 0x157   : > { %824 = vst.msk [vmem:[%s1455_s29 + $0xb8] sm:$0xff] %vm800_vm1, %v727_v12  ;;  %v695_v60 = vpop.trf.xlu1 }
 0x158   : > { %808 = vst.msk [vmem:[%s1455_s29 + $0x38] sm:$0xff] %vm800_vm1, %v695_v60 }
 0x15a   : > { %v728_v55 = vpop.trf.xlu0 }
 0x15b   : > { %825 = vst.msk [vmem:[%s1455_s29 + $0xc0] sm:$0xff] %vm800_vm1, %v728_v55  ;;  %v696_v0 = vpop.trf.xlu1 }
 0x15c   : > { %809 = vst.msk [vmem:[%s1455_s29 + $0x40] sm:$0xff] %vm800_vm1, %v696_v0 }
 0x15e   : > { %v729_v48 = vpop.trf.xlu0 }
 0x15f   : > { %826 = vst.msk [vmem:[%s1455_s29 + $0xc8] sm:$0xff] %vm800_vm1, %v729_v48  ;;  %v697_v62 = vpop.trf.xlu1 }
 0x160   : > { %810 = vst.msk [vmem:[%s1455_s29 + $0x48] sm:$0xff] %vm800_vm1, %v697_v62 }
 0x162   : > { %v730_v51 = vpop.trf.xlu0 }
 0x163   : > { %827 = vst.msk [vmem:[%s1455_s29 + $0xd0] sm:$0xff] %vm800_vm1, %v730_v51  ;;  %v698_v2 = vpop.trf.xlu1 }
 0x164   : > { %811 = vst.msk [vmem:[%s1455_s29 + $0x50] sm:$0xff] %vm800_vm1, %v698_v2 }
 0x166   : > { %v731_v20 = vpop.trf.xlu0 }
 0x167   : > { %828 = vst.msk [vmem:[%s1455_s29 + $0xd8] sm:$0xff] %vm800_vm1, %v731_v20  ;;  %v699_v39 = vpop.trf.xlu1 }
 0x168   : > { %812 = vst.msk [vmem:[%s1455_s29 + $0x58] sm:$0xff] %vm800_vm1, %v699_v39 }
 0x16a   : > { %v732_v6 = vpop.trf.xlu0 }
 0x16b   : > { %829 = vst.msk [vmem:[%s1455_s29 + $0xe0] sm:$0xff] %vm800_vm1, %v732_v6  ;;  %v700_v36 = vpop.trf.xlu1 }
 0x16c   : > { %813 = vst.msk [vmem:[%s1455_s29 + $0x60] sm:$0xff] %vm800_vm1, %v700_v36 }
 0x16e   : > { %v733_v38 = vpop.trf.xlu0 }
 0x16f   : > { %830 = vst.msk [vmem:[%s1455_s29 + $0xe8] sm:$0xff] %vm800_vm1, %v733_v38  ;;  %v701_v26 = vpop.trf.xlu1 }
 0x170   : > { %814 = vst.msk [vmem:[%s1455_s29 + $0x68] sm:$0xff] %vm800_vm1, %v701_v26 }
 0x172   : > { %v734_v37 = vpop.trf.xlu0 }
 0x173   : > { %831 = vst.msk [vmem:[%s1455_s29 + $0xf0] sm:$0xff] %vm800_vm1, %v734_v37  ;;  %v702_v57 = vpop.trf.xlu1 }
 0x174   : > { %815 = vst.msk [vmem:[%s1455_s29 + $0x70] sm:$0xff] %vm800_vm1, %v702_v57 }
 0x176   : > { %v735_v33 = vpop.trf.xlu0 }
 0x177   : > { %832 = vst.msk [vmem:[%s1455_s29 + $0xf8] sm:$0xff] %vm800_vm1, %v735_v33  ;;  %v703_v4 = vpop.trf.xlu1 }
 0x178   : > { %816 = vst.msk [vmem:[%s1455_s29 + $0x78] sm:$0xff] %vm800_vm1, %v703_v4 }
 0x17a   : > { %v752_v63 = vpop.trf.xlu0 }
 0x17b   : > { %833 = vst.msk [vmem:[%s1455_s29 + $0x100] sm:$0xff] %vm800_vm1, %v752_v63  ;;  %v784_v30 = vpop.trf.xlu1 }
 0x17c   : > { %849 = vst.msk [vmem:[%s1455_s29 + $0x180] sm:$0xff] %vm800_vm1, %v784_v30 }
 0x17e   : > { %v753_v13 = vpop.trf.xlu0 }
 0x17f   : > { %834 = vst.msk [vmem:[%s1455_s29 + $0x108] sm:$0xff] %vm800_vm1, %v753_v13  ;;  %v785_v46 = vpop.trf.xlu1 }
 0x180   : > { %850 = vst.msk [vmem:[%s1455_s29 + $0x188] sm:$0xff] %vm800_vm1, %v785_v46 }
 0x182   : > { %v754_v53 = vpop.trf.xlu0 }
 0x183   : > { %835 = vst.msk [vmem:[%s1455_s29 + $0x110] sm:$0xff] %vm800_vm1, %v754_v53  ;;  %v786_v54 = vpop.trf.xlu1 }
 0x184   : > { %851 = vst.msk [vmem:[%s1455_s29 + $0x190] sm:$0xff] %vm800_vm1, %v786_v54 }
 0x186   : > { %v755_v56 = vpop.trf.xlu0 }
 0x187   : > { %836 = vst.msk [vmem:[%s1455_s29 + $0x118] sm:$0xff] %vm800_vm1, %v755_v56  ;;  %v787_v22 = vpop.trf.xlu1 }
 0x188   : > { %852 = vst.msk [vmem:[%s1455_s29 + $0x198] sm:$0xff] %vm800_vm1, %v787_v22 }
 0x18a   : > { %v756_v16 = vpop.trf.xlu0 }
 0x18b   : > { %837 = vst.msk [vmem:[%s1455_s29 + $0x120] sm:$0xff] %vm800_vm1, %v756_v16  ;;  %v788_v50 = vpop.trf.xlu1 }
 0x18c   : > { %853 = vst.msk [vmem:[%s1455_s29 + $0x1a0] sm:$0xff] %vm800_vm1, %v788_v50 }
 0x18e   : > { %v757_v59 = vpop.trf.xlu0 }
 0x18f   : > { %838 = vst.msk [vmem:[%s1455_s29 + $0x128] sm:$0xff] %vm800_vm1, %v757_v59  ;;  %v789_v32 = vpop.trf.xlu1 }
 0x190   : > { %854 = vst.msk [vmem:[%s1455_s29 + $0x1a8] sm:$0xff] %vm800_vm1, %v789_v32 }
 0x192   : > { %v758_v7 = vpop.trf.xlu0 }
 0x193   : > { %839 = vst.msk [vmem:[%s1455_s29 + $0x130] sm:$0xff] %vm800_vm1, %v758_v7  ;;  %v790_v52 = vpop.trf.xlu1 }
 0x194   : > { %855 = vst.msk [vmem:[%s1455_s29 + $0x1b0] sm:$0xff] %vm800_vm1, %v790_v52 }
 0x196   : > { %v759_v14 = vpop.trf.xlu0 }
 0x197   : > { %840 = vst.msk [vmem:[%s1455_s29 + $0x138] sm:$0xff] %vm800_vm1, %v759_v14  ;;  %v791_v28 = vpop.trf.xlu1 }
 0x198   : > { %856 = vst.msk [vmem:[%s1455_s29 + $0x1b8] sm:$0xff] %vm800_vm1, %v791_v28 }
 0x19a   : > { %v760_v11 = vpop.trf.xlu0 }
 0x19b   : > { %841 = vst.msk [vmem:[%s1455_s29 + $0x140] sm:$0xff] %vm800_vm1, %v760_v11  ;;  %v792_v61 = vpop.trf.xlu1 }
 0x19c   : > { %857 = vst.msk [vmem:[%s1455_s29 + $0x1c0] sm:$0xff] %vm800_vm1, %v792_v61 }
 0x19e   : > { %v761_v5 = vpop.trf.xlu0 }
 0x19f   : > { %842 = vst.msk [vmem:[%s1455_s29 + $0x148] sm:$0xff] %vm800_vm1, %v761_v5  ;;  %v793_v1 = vpop.trf.xlu1 }
 0x1a0   : > { %858 = vst.msk [vmem:[%s1455_s29 + $0x1c8] sm:$0xff] %vm800_vm1, %v793_v1 }
 0x1a2   : > { %v762_v27 = vpop.trf.xlu0 }
 0x1a3   : > { %843 = vst.msk [vmem:[%s1455_s29 + $0x150] sm:$0xff] %vm800_vm1, %v762_v27  ;;  %v794_v41 = vpop.trf.xlu1 }
 0x1a4   : > { %859 = vst.msk [vmem:[%s1455_s29 + $0x1d0] sm:$0xff] %vm800_vm1, %v794_v41 }
 0x1a6   : > { %v763_v19 = vpop.trf.xlu0 }
 0x1a7   : > { %844 = vst.msk [vmem:[%s1455_s29 + $0x158] sm:$0xff] %vm800_vm1, %v763_v19  ;;  %v795_v49 = vpop.trf.xlu1 }
 0x1a8   : > { %860 = vst.msk [vmem:[%s1455_s29 + $0x1d8] sm:$0xff] %vm800_vm1, %v795_v49 }
 0x1aa   : > { %v764_v58 = vpop.trf.xlu0 }
 0x1ab   : > { %845 = vst.msk [vmem:[%s1455_s29 + $0x160] sm:$0xff] %vm800_vm1, %v764_v58  ;;  %v796_v23 = vpop.trf.xlu1 }
 0x1ac   : > { %861 = vst.msk [vmem:[%s1455_s29 + $0x1e0] sm:$0xff] %vm800_vm1, %v796_v23 }
 0x1ae   : > { %v765_v18 = vpop.trf.xlu0 }
 0x1af   : > { %846 = vst.msk [vmem:[%s1455_s29 + $0x168] sm:$0xff] %vm800_vm1, %v765_v18  ;;  %v797_v45 = vpop.trf.xlu1 }
 0x1b0   : > { %862 = vst.msk [vmem:[%s1455_s29 + $0x1e8] sm:$0xff] %vm800_vm1, %v797_v45 }
 0x1b2   : > { %v766_v35 = vpop.trf.xlu0 }
 0x1b3   : > { %847 = vst.msk [vmem:[%s1455_s29 + $0x170] sm:$0xff] %vm800_vm1, %v766_v35  ;;  %v798_v25 = vpop.trf.xlu1 }
 0x1b4   : > { %863 = vst.msk [vmem:[%s1455_s29 + $0x1f0] sm:$0xff] %vm800_vm1, %v798_v25 }
 0x1b6   : > { %v767_v17 = vpop.trf.xlu0 }
 0x1b7   : > { %848 = vst.msk [vmem:[%s1455_s29 + $0x178] sm:$0xff] %vm800_vm1, %v767_v17  ;;  %v799_v10 = vpop.trf.xlu1 }
 0x1b8   : > { %864 = vst.msk [vmem:[%s1455_s29 + $0x1f8] sm:$0xff] %vm800_vm1, %v799_v10 }
 0x1b9 PF: > { %s12_s9 = sadd.s32 1, %s973_s9  }
 0x1ba   : > { %p9_p5 = scmp.ge.s32.totalorder %s12_s9, 6  }
 0x1bc   :  { %11 = sbr.rel (!%p9_p5) target bundleno = 1 (0x1), region = 58 }

// kernel: tpu_custom_call.1
= control target key start
LH: loop header
LB: loop body
LE: loop exit
PB: predicated region body
PF: predicated region fallthrough
CT: control target
= control target key end

     0   :  { %7 = vsyncpa [#allocation3], 0  ;;  %s1384_s0 = inlined_call_operand.vmem [shape: f32[1,2048], index: 0, kind: input, shape index: {}]   ;;  %s1385_s1 = inlined_call_operand.vmem [shape: f32[40,1], index: 1, kind: input, shape index: {}]   ;;  %s1386_s2 = inlined_call_operand.hbm [shape: f32[40,2048], index: 2, kind: output, shape index: {}]  }
   0x1   :  { %9 = vsyncpa [#allocation3 + $0x1], 0  ;;  %s937_s9 = smov 0   ;;  %s939_s10 = smov 0  }
   0x2   :  { %s941_s11 = smov 0   ;;  %s943_s12 = smov 0  }
   0x3 LB: > { %s958_s13 = sadd.s32 4294967295, %s908_s12   ;;  %s763_s14 = sadd.s32 4294967294, %s908_s12   ;;  %s908_s12 = sphi %s943_s12, %s1392_s12   ;;  %s904_s11 = sphi %s941_s11, %s1391_s11   ;;  %s900_s10 = sphi %s939_s10, %s1390_s10   ;;  %s896_s9 = sphi %s937_s9, %s1389_s9  }
   0x4   : > { %s962_s15 = sadd.s32 1, %s908_s12   ;;  %s69_s16 = sadd.s32 1, %s904_s11 }
   0x5   : > { %s66_s17 = ssub.s32 %s908_s12, %s962_s15  ;;  %p79_p0 = scmp.ne.s32.totalorder %s904_s11, %s900_s10 }
   0x6   : > { %p67_p1 = scmp.eq.s32.totalorder %s66_s17, 0  ;;  %p80_p2 = scmp.eq.s32.totalorder %s958_s13, 3 }
   0x7   : > { %p85_p3 = scmp.ne.s32.totalorder %s900_s10, %s896_s9  ;;  %p86_p4 = scmp.eq.s32.totalorder %s763_s14, 3 }
   0x8   : > { %s973_s18 = scalar_select %p67_p1, %s904_s11, %s69_s16  }
   0x9   : > { %p975_p5 = por %p80_p2, %p79_p0  ;;  %p979_p6 = por %p86_p4, %p85_p3 }
   0xa   : > { %p766_p7 = scmp.ge.s32.totalorder %s908_s12, 1  ;;  %p115_p8 = scmp.lt.s32.totalorder %s908_s12, 5 }
   0xc   : > { %p116_p9 = pnand %p766_p7, %p115_p8 }
   0xd   : > { %v144_v0 = vld [vmem:[%s1385_s1 + $0x10] sm:$0xff] (!%p116_p9)  ;;  %v142_v1 = vld [vmem:[%s1385_s1] sm:$0xff] (!%p116_p9)  ;;  %v910_v2 = vmov (!%p116_p9), 0   ;;  %v145_v3 = vld [vmem:[%s1385_s1 + $0x18] sm:$0xff] (!%p116_p9)  ;;  %s767_s3 = sshll.u32 (!%p116_p9), %s958_s13, 2  ;;  %v174_v6 = vlaneseq (!%p116_p9)  ;;  %v917_v30 = vmov (!%p116_p9), -1.0  }
   0xe   : > { %119 = sbr.rel (%p116_p9) target bundleno = 275 (0x113), region = 28  ;;  %845 = vset.pattern.permute.xlu1 (!%p116_p9), %v910_v2  ;;  %844 = vset.pattern.permute.xlu0 (!%p116_p9), %v910_v2  ;;  %v143_v4 = vld [vmem:[%s1385_s1 + $0x8] sm:$0xff] (!%p116_p9)  ;;  %v146_v5 = vld [vmem:[%s1385_s1 + $0x20] sm:$0xff] (!%p116_p9)  ;;  %p137_p10 = scmp.lt.s32.totalorder (!%p116_p9), %s767_s3, 15  ;;  %v911_v18 = vmov (!%p116_p9), -0.0015936783  }
   0xf   : > { %160 = vperm.xlu1 (!%p116_p9), %845, %v144_v0   ;;  %150 = vperm.xlu0 (!%p116_p9), %844, %v142_v1   ;;  %v175_v7 = vshrl.u32 (!%p116_p9), %v174_v6, 7  ;;  %v912_v20 = vmov (!%p116_p9), 0.025358286   ;;  %v913_v22 = vmov (!%p116_p9), -0.23502903   ;;  %s133_s7 = sand.u32 (!%p116_p9), 1, %s900_s10  }
  0x10   : > { %v914_v24 = vmov (!%p116_p9), 1.335158   ;;  %v915_v26 = vmov (!%p116_p9), -4.058695   ;;  %v916_v28 = vmov (!%p116_p9), 4.934801  }
  0x11   : > { %v1001_v8 = vadd.s32 (!%p116_p9), 16, %v175_v7  ;;  %v176_v9 = vsub.s32 (!%p116_p9), 0, %v175_v7  ;;  %v180_v10 = vsub.s32 (!%p116_p9), 1, %v175_v7  ;;  %v184_v11 = vsub.s32 (!%p116_p9), 2, %v175_v7  ;;  %s793_s8 = smul.u32 (!%p116_p9), 160, %s133_s7  ;;  %s792_s16 = sshll.u32 (!%p116_p9), %s958_s13, 9 }
  0x12   : > { %v188_v12 = vsub.s32 (!%p116_p9), 3, %v175_v7  ;;  %s1333_s23 = scalar_lea.hbm (!%p116_p9), %s1386_s2, %s792_s16  ;;  %s1343_s13 = scalar_lea.sflag (!%p116_p9), [#allocation3], %s133_s7 }
  0x13   : > { %165 = vperm.xlu1 (!%p116_p9), %845, %v145_v3   ;;  %155 = vperm.xlu0 (!%p116_p9), %844, %v143_v4   ;;  %vm342_vm0 = vcmp.lt.s32.totalorder (!%p116_p9), %v1001_v8, 20  ;;  %s1192_s14 = scalar_lea.vmem (!%p116_p9), [#allocation2], %s793_s8  ;;  %s918_s25 = smov (!%p116_p9), [#allocation2]  }
  0x14   : > { %v1017_v19 = vsel (!%p116_p9), %vm342_vm0, -0.00039523683, %v911_v18  ;;  %v1021_v21 = vsel (!%p116_p9), %vm342_vm0, 0.0072751846, %v912_v20  ;;  %v1025_v23 = vsel (!%p116_p9), %vm342_vm0, -0.08208174, %v913_v22 }
  0x15   : > { %s1394_s3 = smov (!%p137_p10, %s767_s3), 15  ;;  %v1029_v25 = vsel %vm342_vm0, 0.5992422, %v914_v24  ;;  %v1033_v27 = vsel %vm342_vm0, -2.5501604, %v915_v26  ;;  %s704_s17 = sshll.u32 %s1192_s14, 4  ;;  %s1335_s17 = int_to_ptr.vmem [resolvable:$true] %s704_s17 }
  0x16   : > { %s139_s6 = scalar_lea.vmem %s1384_s0, %s1394_s3  ;;  %v1037_v29 = vsel %vm342_vm0, 5.1677127, %v916_v28  ;;  %v1041_v31 = vsel %vm342_vm0, -3.1415927, %v917_v30  ;;  %s846_s24 = scalar_lea.vmem %s1335_s17, 2560 }
  0x17   : > { %170 = vperm.xlu0 %844, %v146_v5   ;;  %v147_v13 = vld [vmem:[%s139_s6] sm:$0xf]  ;;  %p847_p11 = scmp.ne.s32.totalorder %s1335_s17, %s846_s24  ;;  %s850_s26 = sshll.u32 %s918_s25, 4  ;;  %s851_s26 = int_to_ptr.vmem [resolvable:$false] %s850_s26 }
  0x18   : > { %v1007_v14 = vrot.slane %v147_v13, %v176_v9  ;;  %v1009_v15 = vrot.slane %v147_v13, %v180_v10  ;;  %v1011_v16 = vrot.slane %v147_v13, %v184_v11  ;;  %v1013_v17 = vrot.slane %v147_v13, %v188_v12  ;;  %s852_s27 = scalar_lea.vmem %s851_s26, 5120  ;;  %p853_p0 = scmp.lt.s32.totalorder %s1335_s17, %s851_s26 }
  0x19   : > { %p848_p12 = pnand %p847_p11, %p975_p5  ;;  %p854_p1 = scmp.lt.s32.totalorder %s852_s27, %s846_s24 }
  0x1b   : > { %p849_p13 = pneg %p848_p12  ;;  %p855_p2 = por %p854_p1, %p853_p0 }
  0x1d   : > { %p856_p3 = pnand %p855_p2, %p849_p13 }
  0x8e   : > { %v161_v32 = vpop.permute.xlu1 %160  ;;  %v151_v33 = vpop.permute.xlu0 %150 }
  0x8f   : > { %v202_v34 = vmul.f32 %v1007_v14, %v161_v32  ;;  %v203_v35 = vmul.f32 %v1009_v15, %v161_v32  ;;  %v204_v36 = vmul.f32 %v1011_v16, %v161_v32  ;;  %v205_v37 = vmul.f32 %v1013_v17, %v161_v32 }
  0x90   : > { %v194_v38 = vmul.f32 %v1007_v14, %v151_v33  ;;  %v195_v39 = vmul.f32 %v1009_v15, %v151_v33  ;;  %v196_v40 = vmul.f32 %v1011_v16, %v151_v33  ;;  %v197_v41 = vmul.f32 %v1013_v17, %v151_v33 }
  0x91   : > { %v222_v42 = vmul.f32 0.5, %v202_v34  ;;  %v223_v43 = vmul.f32 0.5, %v203_v35  ;;  %v224_v44 = vmul.f32 0.5, %v204_v36  ;;  %v225_v45 = vmul.f32 0.5, %v205_v37 }
  0x92   : > { %v214_v46 = vmul.f32 0.5, %v194_v38  ;;  %v215_v47 = vmul.f32 0.5, %v195_v39  ;;  %v216_v48 = vmul.f32 0.5, %v196_v40  ;;  %v217_v49 = vmul.f32 0.5, %v197_v41 }
  0x93   : > { %v242_v50 = vfloor.f32 %v222_v42  ;;  %v243_v51 = vfloor.f32 %v223_v43  ;;  %v244_v52 = vfloor.f32 %v224_v44  ;;  %v245_v53 = vfloor.f32 %v225_v45  ;;  %v1091_v42 = vpop.permute.xlu1 %165 }
  0x94   : > { %v234_v54 = vfloor.f32 %v214_v46  ;;  %v235_v55 = vfloor.f32 %v215_v47  ;;  %v236_v56 = vfloor.f32 %v216_v48  ;;  %v237_v57 = vfloor.f32 %v217_v49 }
  0x95   : > { %v262_v58 = vadd.f32 %v242_v50, %v242_v50  ;;  %v263_v59 = vadd.f32 %v243_v51, %v243_v51  ;;  %v264_v60 = vadd.f32 %v244_v52, %v244_v52  ;;  %v265_v61 = vadd.f32 %v245_v53, %v245_v53 }
  0x96   : > { %v254_v62 = vadd.f32 %v234_v54, %v234_v54  ;;  %v255_v63 = vadd.f32 %v235_v55, %v235_v55  ;;  %v256_v0 = vadd.f32 %v236_v56, %v236_v56  ;;  %v257_v1 = vadd.f32 %v237_v57, %v237_v57 }
  0x97   : > { %v282_v2 = vsub.f32 %v202_v34, %v262_v58  ;;  %v283_v3 = vsub.f32 %v203_v35, %v263_v59  ;;  %v284_v4 = vsub.f32 %v204_v36, %v264_v60  ;;  %v285_v5 = vsub.f32 %v205_v37, %v265_v61 }
  0x98   : > { %v274_v6 = vsub.f32 %v194_v38, %v254_v62  ;;  %v275_v7 = vsub.f32 %v195_v39, %v255_v63  ;;  %v276_v9 = vsub.f32 %v196_v40, %v256_v0  ;;  %v277_v10 = vsub.f32 %v197_v41, %v257_v1 }
  0x99   : > { %v776_v11 = vadd.f32 -1.0, %v282_v2  ;;  %v777_v12 = vadd.f32 -1.0, %v283_v3  ;;  %v778_v13 = vadd.f32 -1.0, %v284_v4  ;;  %v779_v18 = vadd.f32 -1.0, %v285_v5 }
  0x9a   : > { %v1051_v20 = vadd.f32 -1.0, %v274_v6  ;;  %v1053_v22 = vadd.f32 -1.0, %v275_v7  ;;  %v1055_v24 = vadd.f32 -1.0, %v276_v9  ;;  %v1057_v26 = vadd.f32 -1.0, %v277_v10 }
  0x9b   : > { %v1059_v28 = vmul.f32 %v776_v11, %v776_v11  ;;  %v1061_v30 = vmul.f32 %v777_v12, %v777_v12  ;;  %v1063_v32 = vmul.f32 %v778_v13, %v778_v13  ;;  %v1065_v33 = vmul.f32 %v779_v18, %v779_v18 }
  0x9c   : > { %v1069_v34 = vsel %vm342_vm0, %v776_v11, 1.0  ;;  %v1073_v35 = vsel %vm342_vm0, %v777_v12, 1.0  ;;  %v1077_v36 = vsel %vm342_vm0, %v778_v13, 1.0  ;;  %v1081_v37 = vsel %vm342_vm0, %v779_v18, 1.0 }
  0x9d   : > { %v358_v38 = vmul.f32 %v1017_v19, %v1059_v28  ;;  %v359_v39 = vmul.f32 %v1017_v19, %v1061_v30  ;;  %v360_v40 = vmul.f32 %v1017_v19, %v1063_v32  ;;  %v361_v41 = vmul.f32 %v1017_v19, %v1065_v33 }
  0x9e   : > { %v1095_v43 = vmul.f32 %v1051_v20, %v1051_v20  ;;  %v1099_v8 = vmul.f32 %v1053_v22, %v1053_v22  ;;  %v1103_v44 = vmul.f32 %v1055_v24, %v1055_v24  ;;  %v1107_v45 = vmul.f32 %v1057_v26, %v1057_v26 }
  0x9f   : > { %v383_v19 = vadd.f32 %v1021_v21, %v358_v38  ;;  %v384_v46 = vadd.f32 %v1021_v21, %v359_v39  ;;  %v385_v47 = vadd.f32 %v1021_v21, %v360_v40  ;;  %v386_v48 = vadd.f32 %v1021_v21, %v361_v41 }
  0xa0   : > { %v350_v49 = vmul.f32 -0.00039523683, %v1095_v43  ;;  %v351_v50 = vmul.f32 -0.00039523683, %v1099_v8  ;;  %v352_v51 = vmul.f32 -0.00039523683, %v1103_v44  ;;  %v1118_v52 = vmul.f32 %v1007_v14, %v1091_v42 }
  0xa1   : > { %v403_v53 = vmul.f32 %v383_v19, %v1059_v28  ;;  %v404_v54 = vmul.f32 %v384_v46, %v1061_v30  ;;  %v405_v55 = vmul.f32 %v385_v47, %v1063_v32  ;;  %v406_v56 = vmul.f32 %v386_v48, %v1065_v33 }
  0xa2   : > { %v353_v21 = vmul.f32 -0.00039523683, %v1107_v45  ;;  %v375_v57 = vadd.f32 0.0072751846, %v350_v49  ;;  %v376_v58 = vadd.f32 0.0072751846, %v351_v50  ;;  %v1127_v59 = vmul.f32 %v1009_v15, %v1091_v42 }
  0xa3   : > { %v428_v60 = vadd.f32 %v1025_v23, %v403_v53  ;;  %v429_v61 = vadd.f32 %v1025_v23, %v404_v54  ;;  %v430_v62 = vadd.f32 %v1025_v23, %v405_v55  ;;  %v431_v63 = vadd.f32 %v1025_v23, %v406_v56 }
  0xa4   : > { %v377_v0 = vadd.f32 0.0072751846, %v352_v51  ;;  %v378_v1 = vadd.f32 0.0072751846, %v353_v21  ;;  %v395_v2 = vmul.f32 %v375_v57, %v1095_v43  ;;  %v396_v3 = vmul.f32 %v376_v58, %v1099_v8 }
  0xa5   : > { %v448_v4 = vmul.f32 %v428_v60, %v1059_v28  ;;  %v449_v5 = vmul.f32 %v429_v61, %v1061_v30  ;;  %v450_v6 = vmul.f32 %v430_v62, %v1063_v32  ;;  %v451_v7 = vmul.f32 %v431_v63, %v1065_v33 }
  0xa6   : > { %v397_v9 = vmul.f32 %v377_v0, %v1103_v44  ;;  %v398_v10 = vmul.f32 %v378_v1, %v1107_v45  ;;  %v420_v11 = vadd.f32 -0.08208174, %v395_v2  ;;  %v421_v23 = vadd.f32 -0.08208174, %v396_v3 }
  0xa7   : > { %v473_v12 = vadd.f32 %v1029_v25, %v448_v4  ;;  %v474_v13 = vadd.f32 %v1029_v25, %v449_v5  ;;  %v475_v18 = vadd.f32 %v1029_v25, %v450_v6  ;;  %v476_v38 = vadd.f32 %v1029_v25, %v451_v7 }
  0xa8   : > { %v422_v39 = vadd.f32 -0.08208174, %v397_v9  ;;  %v423_v40 = vadd.f32 -0.08208174, %v398_v10  ;;  %v440_v41 = vmul.f32 %v420_v11, %v1095_v43  ;;  %v441_v19 = vmul.f32 %v421_v23, %v1099_v8 }
  0xa9   : > { %v493_v46 = vmul.f32 %v473_v12, %v1059_v28  ;;  %v494_v47 = vmul.f32 %v474_v13, %v1061_v30  ;;  %v495_v48 = vmul.f32 %v475_v18, %v1063_v32  ;;  %v496_v49 = vmul.f32 %v476_v38, %v1065_v33 }
  0xaa   : > { %v442_v50 = vmul.f32 %v422_v39, %v1103_v44  ;;  %v443_v51 = vmul.f32 %v423_v40, %v1107_v45  ;;  %v465_v25 = vadd.f32 0.5992422, %v440_v41  ;;  %v466_v53 = vadd.f32 0.5992422, %v441_v19 }
  0xab   : > { %v518_v54 = vadd.f32 %v1033_v27, %v493_v46  ;;  %v519_v55 = vadd.f32 %v1033_v27, %v494_v47  ;;  %v520_v56 = vadd.f32 %v1033_v27, %v495_v48  ;;  %v521_v21 = vadd.f32 %v1033_v27, %v496_v49 }
  0xac   : > { %v467_v57 = vadd.f32 0.5992422, %v442_v50  ;;  %v468_v58 = vadd.f32 0.5992422, %v443_v51  ;;  %v485_v60 = vmul.f32 %v465_v25, %v1095_v43  ;;  %v486_v61 = vmul.f32 %v466_v53, %v1099_v8 }
  0xad   : > { %v538_v62 = vmul.f32 %v518_v54, %v1059_v28  ;;  %v539_v63 = vmul.f32 %v519_v55, %v1061_v30  ;;  %v540_v0 = vmul.f32 %v520_v56, %v1063_v32  ;;  %v541_v1 = vmul.f32 %v521_v21, %v1065_v33 }
  0xae   : > { %v487_v2 = vmul.f32 %v467_v57, %v1103_v44  ;;  %v488_v27 = vmul.f32 %v468_v58, %v1107_v45  ;;  %v510_v3 = vadd.f32 -2.5501604, %v485_v60  ;;  %v511_v4 = vadd.f32 -2.5501604, %v486_v61 }
  0xaf   : > { %v563_v5 = vadd.f32 %v1037_v29, %v538_v62  ;;  %v564_v6 = vadd.f32 %v1037_v29, %v539_v63  ;;  %v565_v7 = vadd.f32 %v1037_v29, %v540_v0  ;;  %v566_v9 = vadd.f32 %v1037_v29, %v541_v1 }
  0xb0   : > { %v512_v10 = vadd.f32 -2.5501604, %v487_v2  ;;  %v513_v11 = vadd.f32 -2.5501604, %v488_v27  ;;  %v530_v23 = vmul.f32 %v510_v3, %v1095_v43  ;;  %v531_v12 = vmul.f32 %v511_v4, %v1099_v8 }
  0xb1   : > { %v583_v13 = vmul.f32 %v563_v5, %v1059_v28  ;;  %v584_v18 = vmul.f32 %v564_v6, %v1061_v30  ;;  %v585_v38 = vmul.f32 %v565_v7, %v1063_v32  ;;  %v586_v39 = vmul.f32 %v566_v9, %v1065_v33 }
  0xb2   : > { %v532_v40 = vmul.f32 %v512_v10, %v1103_v44  ;;  %v533_v29 = vmul.f32 %v513_v11, %v1107_v45  ;;  %v555_v41 = vadd.f32 5.1677127, %v530_v23  ;;  %v556_v19 = vadd.f32 5.1677127, %v531_v12 }
  0xb3   : > { %v608_v46 = vadd.f32 %v1041_v31, %v583_v13  ;;  %v609_v47 = vadd.f32 %v1041_v31, %v584_v18  ;;  %v610_v48 = vadd.f32 %v1041_v31, %v585_v38  ;;  %v611_v28 = vadd.f32 %v1041_v31, %v586_v39 }
  0xb4   : > { %v557_v49 = vadd.f32 5.1677127, %v532_v40  ;;  %v558_v30 = vadd.f32 5.1677127, %v533_v29  ;;  %v575_v32 = vmul.f32 %v555_v41, %v1095_v43  ;;  %v576_v33 = vmul.f32 %v556_v19, %v1099_v8  ;;  %v156_v43 = vpop.permute.xlu0 %155 }
  0xb5   : > { %v658_v50 = vmul.f32 %v1069_v34, %v608_v46  ;;  %v659_v51 = vmul.f32 %v1073_v35, %v609_v47  ;;  %v660_v25 = vmul.f32 %v1077_v36, %v610_v48  ;;  %v661_v53 = vmul.f32 %v1081_v37, %v611_v28 }
  0xb6   : > { %v577_v54 = vmul.f32 %v557_v49, %v1103_v44  ;;  %v578_v55 = vmul.f32 %v558_v30, %v1107_v45  ;;  %v600_v56 = vadd.f32 -3.1415927, %v575_v32  ;;  %v601_v31 = vadd.f32 -3.1415927, %v576_v33 }
  0xb7   : > { %678 = vst [vmem:[%s1192_s14 + $0x40] sm:$0xff] %v658_v50  ;;  %679 = vst [vmem:[%s1192_s14 + $0x48] sm:$0xff] %v659_v51  ;;  %v208_v34 = vmul.f32 %v1011_v16, %v1091_v42  ;;  %v209_v35 = vmul.f32 %v1013_v17, %v1091_v42  ;;  %v226_v36 = vmul.f32 0.5, %v1118_v52  ;;  %v227_v37 = vmul.f32 0.5, %v1127_v59 }
  0xb8   : > { %680 = vst [vmem:[%s1192_s14 + $0x50] sm:$0xff] %v660_v25  ;;  %681 = vst [vmem:[%s1192_s14 + $0x58] sm:$0xff] %v661_v53  ;;  %v602_v8 = vadd.f32 -3.1415927, %v577_v54  ;;  %v603_v44 = vadd.f32 -3.1415927, %v578_v55  ;;  %v650_v45 = vmul.f32 %v1051_v20, %v600_v56  ;;  %v651_v21 = vmul.f32 %v1053_v22, %v601_v31  ;;  %v1222_v30 = vpop.permute.xlu0 %170 }
  0xb9   : > { %v228_v57 = vmul.f32 0.5, %v208_v34  ;;  %v229_v58 = vmul.f32 0.5, %v209_v35  ;;  %v246_v60 = vfloor.f32 %v226_v36  ;;  %v247_v61 = vfloor.f32 %v227_v37 }
  0xba   : > { %v652_v62 = vmul.f32 %v1055_v24, %v602_v8  ;;  %v653_v42 = vmul.f32 %v1057_v26, %v603_v44  ;;  %670 = vst [vmem:[%s1192_s14] sm:$0xff] %v650_v45  ;;  %671 = vst [vmem:[%s1192_s14 + $0x8] sm:$0xff] %v651_v21  ;;  %v198_v63 = vmul.f32 %v1007_v14, %v156_v43 }
  0xbb   : > { %v199_v0 = vmul.f32 %v1009_v15, %v156_v43  ;;  %v248_v1 = vfloor.f32 %v228_v57  ;;  %v249_v20 = vfloor.f32 %v229_v58  ;;  %v266_v2 = vadd.f32 %v246_v60, %v246_v60 }
  0xbc   : > { %v267_v27 = vadd.f32 %v247_v61, %v247_v61  ;;  %672 = vst [vmem:[%s1192_s14 + $0x10] sm:$0xff] %v652_v62  ;;  %673 = vst [vmem:[%s1192_s14 + $0x18] sm:$0xff] %v653_v42  ;;  %v200_v22 = vmul.f32 %v1011_v16, %v156_v43  ;;  %v201_v3 = vmul.f32 %v1013_v17, %v156_v43  ;;  %v218_v4 = vmul.f32 0.5, %v198_v63 }
  0xbd   : > { %v219_v24 = vmul.f32 0.5, %v199_v0  ;;  %v268_v5 = vadd.f32 %v248_v1, %v248_v1  ;;  %v269_v26 = vadd.f32 %v249_v20, %v249_v20  ;;  %v286_v6 = vsub.f32 %v1118_v52, %v266_v2 }
  0xbe   : > { %v287_v7 = vsub.f32 %v1127_v59, %v267_v27  ;;  %v220_v9 = vmul.f32 0.5, %v200_v22  ;;  %v221_v10 = vmul.f32 0.5, %v201_v3  ;;  %v238_v11 = vfloor.f32 %v218_v4 }
  0xbf   : > { %v239_v23 = vfloor.f32 %v219_v24  ;;  %v288_v12 = vsub.f32 %v208_v34, %v268_v5  ;;  %v289_v13 = vsub.f32 %v209_v35, %v269_v26  ;;  %v780_v18 = vadd.f32 -1.0, %v286_v6 }
  0xc0   : > { %v781_v38 = vadd.f32 -1.0, %v287_v7  ;;  %v240_v39 = vfloor.f32 %v220_v9  ;;  %v241_v40 = vfloor.f32 %v221_v10  ;;  %v258_v29 = vadd.f32 %v238_v11, %v238_v11 }
  0xc1   : > { %v259_v41 = vadd.f32 %v239_v23, %v239_v23  ;;  %v782_v19 = vadd.f32 -1.0, %v288_v12  ;;  %v783_v46 = vadd.f32 -1.0, %v289_v13  ;;  %v1218_v47 = vmul.f32 %v780_v18, %v780_v18 }
  0xc2   : > { %v1220_v48 = vmul.f32 %v781_v38, %v781_v38  ;;  %v260_v52 = vadd.f32 %v240_v39, %v240_v39  ;;  %v261_v59 = vadd.f32 %v241_v40, %v241_v40  ;;  %v278_v28 = vsub.f32 %v198_v63, %v258_v29 }
  0xc3   : > { %v279_v49 = vsub.f32 %v199_v0, %v259_v41  ;;  %v1224_v32 = vmul.f32 %v782_v19, %v782_v19  ;;  %v1226_v33 = vmul.f32 %v783_v46, %v783_v46  ;;  %v362_v50 = vmul.f32 -0.0015936783, %v1218_v47 }
  0xc4   : > { %v363_v51 = vmul.f32 -0.0015936783, %v1220_v48  ;;  %v280_v25 = vsub.f32 %v200_v22, %v260_v52  ;;  %v281_v53 = vsub.f32 %v201_v3, %v261_v59  ;;  %v1230_v54 = vadd.f32 -1.0, %v278_v28 }
  0xc5   : > { %v1232_v55 = vadd.f32 -1.0, %v279_v49  ;;  %v364_v56 = vmul.f32 -0.0015936783, %v1224_v32  ;;  %v365_v31 = vmul.f32 -0.0015936783, %v1226_v33  ;;  %v1238_v35 = vmul.f32 %v1007_v14, %v1222_v30 }
  0xc6   : > { %v387_v34 = vadd.f32 0.025358286, %v362_v50  ;;  %v388_v36 = vadd.f32 0.025358286, %v363_v51  ;;  %v1240_v37 = vadd.f32 -1.0, %v280_v25  ;;  %v1242_v43 = vadd.f32 -1.0, %v281_v53 }
  0xc7   : > { %v1246_v8 = vmul.f32 %v1230_v54, %v1230_v54  ;;  %v389_v44 = vadd.f32 0.025358286, %v364_v56  ;;  %v390_v45 = vadd.f32 0.025358286, %v365_v31  ;;  %v1251_v57 = vmul.f32 %v1232_v55, %v1232_v55 }
  0xc8   : > { %v407_v21 = vmul.f32 %v387_v34, %v1218_v47  ;;  %v408_v14 = vmul.f32 %v388_v36, %v1220_v48  ;;  %v1256_v58 = vmul.f32 %v1240_v37, %v1240_v37  ;;  %v1260_v60 = vmul.f32 %v1242_v43, %v1242_v43 }
  0xc9   : > { %v354_v61 = vmul.f32 -0.00039523683, %v1246_v8  ;;  %v409_v62 = vmul.f32 %v389_v44, %v1224_v32  ;;  %v410_v42 = vmul.f32 %v390_v45, %v1226_v33  ;;  %v355_v0 = vmul.f32 -0.00039523683, %v1251_v57 }
  0xca   : > { %v432_v63 = vadd.f32 -0.23502903, %v407_v21  ;;  %v433_v1 = vadd.f32 -0.23502903, %v408_v14  ;;  %v356_v20 = vmul.f32 -0.00039523683, %v1256_v58  ;;  %v1270_v27 = vmul.f32 %v1009_v15, %v1222_v30 }
  0xcb   : > { %v357_v2 = vmul.f32 -0.00039523683, %v1260_v60  ;;  %v434_v22 = vadd.f32 -0.23502903, %v409_v62  ;;  %v435_v3 = vadd.f32 -0.23502903, %v410_v42 }
  0xcc   : > { %v452_v4 = vmul.f32 %v432_v63, %v1218_v47  ;;  %v379_v24 = vadd.f32 0.0072751846, %v354_v61  ;;  %v453_v5 = vmul.f32 %v433_v1, %v1220_v48  ;;  %v380_v26 = vadd.f32 0.0072751846, %v355_v0 }
  0xcd   : > { %v381_v6 = vadd.f32 0.0072751846, %v356_v20  ;;  %v382_v7 = vadd.f32 0.0072751846, %v357_v2  ;;  %v454_v9 = vmul.f32 %v434_v22, %v1224_v32  ;;  %v455_v10 = vmul.f32 %v435_v3, %v1226_v33 }
  0xce   : > { %v477_v11 = vadd.f32 1.335158, %v452_v4  ;;  %v399_v23 = vmul.f32 %v379_v24, %v1246_v8  ;;  %v478_v12 = vadd.f32 1.335158, %v453_v5  ;;  %v400_v15 = vmul.f32 %v380_v26, %v1251_v57 }
  0xcf   : > { %v401_v13 = vmul.f32 %v381_v6, %v1256_v58  ;;  %v402_v18 = vmul.f32 %v382_v7, %v1260_v60  ;;  %v479_v38 = vadd.f32 1.335158, %v454_v9  ;;  %v480_v39 = vadd.f32 1.335158, %v455_v10 }
  0xd0   : > { %v497_v40 = vmul.f32 %v477_v11, %v1218_v47  ;;  %v424_v29 = vadd.f32 -0.08208174, %v399_v23  ;;  %v498_v41 = vmul.f32 %v478_v12, %v1220_v48  ;;  %v425_v19 = vadd.f32 -0.08208174, %v400_v15 }
  0xd1   : > { %v426_v46 = vadd.f32 -0.08208174, %v401_v13  ;;  %v427_v52 = vadd.f32 -0.08208174, %v402_v18  ;;  %v499_v59 = vmul.f32 %v479_v38, %v1224_v32  ;;  %v500_v28 = vmul.f32 %v480_v39, %v1226_v33 }
  0xd2   : > { %v522_v49 = vadd.f32 -4.058695, %v497_v40  ;;  %v444_v50 = vmul.f32 %v424_v29, %v1246_v8  ;;  %v523_v51 = vadd.f32 -4.058695, %v498_v41  ;;  %v445_v25 = vmul.f32 %v425_v19, %v1251_v57 }
  0xd3   : > { %v446_v53 = vmul.f32 %v426_v46, %v1256_v58  ;;  %v447_v56 = vmul.f32 %v427_v52, %v1260_v60  ;;  %v524_v31 = vadd.f32 -4.058695, %v499_v59  ;;  %v525_v34 = vadd.f32 -4.058695, %v500_v28 }
  0xd4   : > { %v542_v36 = vmul.f32 %v522_v49, %v1218_v47  ;;  %v469_v44 = vadd.f32 0.5992422, %v444_v50  ;;  %v543_v45 = vmul.f32 %v523_v51, %v1220_v48  ;;  %v470_v21 = vadd.f32 0.5992422, %v445_v25 }
  0xd5   : > { %v471_v14 = vadd.f32 0.5992422, %v446_v53  ;;  %v472_v61 = vadd.f32 0.5992422, %v447_v56  ;;  %v544_v62 = vmul.f32 %v524_v31, %v1224_v32  ;;  %v545_v42 = vmul.f32 %v525_v34, %v1226_v33 }
  0xd6   : > { %v567_v63 = vadd.f32 4.934801, %v542_v36  ;;  %v489_v0 = vmul.f32 %v469_v44, %v1246_v8  ;;  %v568_v1 = vadd.f32 4.934801, %v543_v45  ;;  %v490_v20 = vmul.f32 %v470_v21, %v1251_v57 }
  0xd7   : > { %v491_v2 = vmul.f32 %v471_v14, %v1256_v58  ;;  %v492_v22 = vmul.f32 %v472_v61, %v1260_v60  ;;  %v569_v3 = vadd.f32 4.934801, %v544_v62  ;;  %v570_v4 = vadd.f32 4.934801, %v545_v42 }
  0xd8   : > { %v587_v24 = vmul.f32 %v567_v63, %v1218_v47  ;;  %v514_v5 = vadd.f32 -2.5501604, %v489_v0  ;;  %v588_v26 = vmul.f32 %v568_v1, %v1220_v48  ;;  %v515_v6 = vadd.f32 -2.5501604, %v490_v20 }
  0xd9   : > { %v516_v7 = vadd.f32 -2.5501604, %v491_v2  ;;  %v517_v9 = vadd.f32 -2.5501604, %v492_v22  ;;  %v589_v10 = vmul.f32 %v569_v3, %v1224_v32  ;;  %v590_v11 = vmul.f32 %v570_v4, %v1226_v33 }
  0xda   : > { %v612_v23 = vadd.f32 -1.0, %v587_v24  ;;  %v534_v12 = vmul.f32 %v514_v5, %v1246_v8  ;;  %v613_v15 = vadd.f32 -1.0, %v588_v26  ;;  %v535_v47 = vmul.f32 %v515_v6, %v1251_v57 }
  0xdb   : > { %v536_v13 = vmul.f32 %v516_v7, %v1256_v58  ;;  %v537_v48 = vmul.f32 %v517_v9, %v1260_v60  ;;  %v614_v18 = vadd.f32 -1.0, %v589_v10  ;;  %v615_v38 = vadd.f32 -1.0, %v590_v11 }
  0xdc   : > { %682 = vst [vmem:[%s1192_s14 + $0x60] sm:$0xff] %v612_v23  ;;  %v559_v39 = vadd.f32 5.1677127, %v534_v12  ;;  %v212_v32 = vmul.f32 %v1011_v16, %v1222_v30  ;;  %683 = vst [vmem:[%s1192_s14 + $0x68] sm:$0xff] %v613_v15  ;;  %v560_v33 = vadd.f32 5.1677127, %v535_v47  ;;  %v213_v41 = vmul.f32 %v1013_v17, %v1222_v30 }
  0xdd   : > { %v561_v40 = vadd.f32 5.1677127, %v536_v13  ;;  %v562_v29 = vadd.f32 5.1677127, %v537_v48  ;;  %684 = vst [vmem:[%s1192_s14 + $0x70] sm:$0xff] %v614_v18  ;;  %685 = vst [vmem:[%s1192_s14 + $0x78] sm:$0xff] %v615_v38 }
  0xde   : > { %v579_v19 = vmul.f32 %v559_v39, %v1246_v8  ;;  %v230_v46 = vmul.f32 0.5, %v1238_v35  ;;  %v231_v52 = vmul.f32 0.5, %v1270_v27  ;;  %v232_v59 = vmul.f32 0.5, %v212_v32 }
  0xdf   : > { %v580_v28 = vmul.f32 %v560_v33, %v1251_v57  ;;  %v581_v16 = vmul.f32 %v561_v40, %v1256_v58  ;;  %v582_v49 = vmul.f32 %v562_v29, %v1260_v60  ;;  %v233_v50 = vmul.f32 0.5, %v213_v41 }
  0xe0   : > { %v604_v51 = vadd.f32 -3.1415927, %v579_v19  ;;  %v250_v25 = vfloor.f32 %v230_v46  ;;  %v251_v17 = vfloor.f32 %v231_v52  ;;  %v252_v30 = vfloor.f32 %v232_v59 }
  0xe1   : > { %v605_v53 = vadd.f32 -3.1415927, %v580_v28  ;;  %v606_v8 = vadd.f32 -3.1415927, %v581_v16  ;;  %v607_v56 = vadd.f32 -3.1415927, %v582_v49  ;;  %v253_v31 = vfloor.f32 %v233_v50 }
  0xe2   : > { %v654_v34 = vmul.f32 %v1230_v54, %v604_v51  ;;  %v270_v57 = vadd.f32 %v250_v25, %v250_v25  ;;  %v271_v36 = vadd.f32 %v251_v17, %v251_v17  ;;  %v272_v58 = vadd.f32 %v252_v30, %v252_v30 }
  0xe3   : > { %v655_v60 = vmul.f32 %v1232_v55, %v605_v53  ;;  %v656_v44 = vmul.f32 %v1240_v37, %v606_v8  ;;  %v657_v45 = vmul.f32 %v1242_v43, %v607_v56  ;;  %v273_v21 = vadd.f32 %v253_v31, %v253_v31 }
  0xe4   : > { %674 = vst [vmem:[%s1192_s14 + $0x20] sm:$0xff] %v654_v34  ;;  %v290_v14 = vsub.f32 %v1238_v35, %v270_v57  ;;  %v291_v61 = vsub.f32 %v1270_v27, %v271_v36  ;;  %v292_v62 = vsub.f32 %v212_v32, %v272_v58 }
  0xe5   : > { %675 = vst [vmem:[%s1192_s14 + $0x28] sm:$0xff] %v655_v60  ;;  %676 = vst [vmem:[%s1192_s14 + $0x30] sm:$0xff] %v656_v44  ;;  %v293_v54 = vsub.f32 %v213_v41, %v273_v21 }
  0xe6   : > { %677 = vst [vmem:[%s1192_s14 + $0x38] sm:$0xff] %v657_v45  ;;  %v784_v42 = vadd.f32 -1.0, %v290_v14  ;;  %v785_v63 = vadd.f32 -1.0, %v291_v61  ;;  %v786_v0 = vadd.f32 -1.0, %v292_v62 }
  0xe7   : > { %v787_v1 = vadd.f32 -1.0, %v293_v54 }
  0xe8   : > { %v330_v55 = vmul.f32 %v784_v42, %v784_v42  ;;  %v331_v20 = vmul.f32 %v785_v63, %v785_v63  ;;  %v332_v37 = vmul.f32 %v786_v0, %v786_v0 }
  0xe9   : > { %v333_v2 = vmul.f32 %v787_v1, %v787_v1 }
  0xea   : > { %v366_v43 = vmul.f32 -0.0015936783, %v330_v55  ;;  %v367_v22 = vmul.f32 -0.0015936783, %v331_v20  ;;  %v368_v3 = vmul.f32 -0.0015936783, %v332_v37 }
  0xeb   : > { %v369_v4 = vmul.f32 -0.0015936783, %v333_v2 }
  0xec   : > { %v391_v35 = vadd.f32 0.025358286, %v366_v43  ;;  %v392_v24 = vadd.f32 0.025358286, %v367_v22  ;;  %v393_v27 = vadd.f32 0.025358286, %v368_v3 }
  0xed   : > { %v394_v5 = vadd.f32 0.025358286, %v369_v4 }
  0xee   : > { %v411_v26 = vmul.f32 %v391_v35, %v330_v55  ;;  %v412_v6 = vmul.f32 %v392_v24, %v331_v20  ;;  %v413_v7 = vmul.f32 %v393_v27, %v332_v37 }
  0xef   : > { %v414_v9 = vmul.f32 %v394_v5, %v333_v2 }
  0xf0   : > { %v436_v10 = vadd.f32 -0.23502903, %v411_v26  ;;  %v437_v11 = vadd.f32 -0.23502903, %v412_v6  ;;  %v438_v23 = vadd.f32 -0.23502903, %v413_v7 }
  0xf1   : > { %v439_v12 = vadd.f32 -0.23502903, %v414_v9 }
  0xf2   : > { %v456_v15 = vmul.f32 %v436_v10, %v330_v55  ;;  %v457_v47 = vmul.f32 %v437_v11, %v331_v20  ;;  %v458_v13 = vmul.f32 %v438_v23, %v332_v37 }
  0xf3   : > { %v459_v48 = vmul.f32 %v439_v12, %v333_v2 }
  0xf4   : > { %v481_v18 = vadd.f32 1.335158, %v456_v15  ;;  %v482_v38 = vadd.f32 1.335158, %v457_v47  ;;  %v483_v39 = vadd.f32 1.335158, %v458_v13 }
  0xf5   : > { %v484_v32 = vadd.f32 1.335158, %v459_v48 }
  0xf6   : > { %v501_v33 = vmul.f32 %v481_v18, %v330_v55  ;;  %v502_v40 = vmul.f32 %v482_v38, %v331_v20  ;;  %v503_v29 = vmul.f32 %v483_v39, %v332_v37 }
  0xf7   : > { %v504_v41 = vmul.f32 %v484_v32, %v333_v2 }
  0xf8   : > { %v526_v19 = vadd.f32 -4.058695, %v501_v33  ;;  %v527_v46 = vadd.f32 -4.058695, %v502_v40  ;;  %v528_v52 = vadd.f32 -4.058695, %v503_v29 }
  0xf9   : > { %v529_v59 = vadd.f32 -4.058695, %v504_v41 }
  0xfa   : > { %v546_v28 = vmul.f32 %v526_v19, %v330_v55  ;;  %v547_v16 = vmul.f32 %v527_v46, %v331_v20  ;;  %v548_v49 = vmul.f32 %v528_v52, %v332_v37 }
  0xfb   : > { %v549_v50 = vmul.f32 %v529_v59, %v333_v2 }
  0xfc   : > { %v571_v51 = vadd.f32 4.934801, %v546_v28  ;;  %v572_v25 = vadd.f32 4.934801, %v547_v16  ;;  %v573_v17 = vadd.f32 4.934801, %v548_v49 }
  0xfd   : > { %v574_v30 = vadd.f32 4.934801, %v549_v50 }
  0xfe   : > { %v591_v53 = vmul.f32 %v571_v51, %v330_v55  ;;  %v592_v8 = vmul.f32 %v572_v25, %v331_v20  ;;  %v593_v56 = vmul.f32 %v573_v17, %v332_v37 }
  0xff   : > { %v594_v31 = vmul.f32 %v574_v30, %v333_v2 }
 0x100   : > { %v616_v34 = vadd.f32 -1.0, %v591_v53  ;;  %v617_v57 = vadd.f32 -1.0, %v592_v8  ;;  %v618_v36 = vadd.f32 -1.0, %v593_v56 }
 0x101   : > { %v619_v58 = vadd.f32 -1.0, %v594_v31 }
 0x102   : > { %686 = vst [vmem:[%s1192_s14 + $0x80] sm:$0xff] %v616_v34  ;;  %687 = vst [vmem:[%s1192_s14 + $0x88] sm:$0xff] %v617_v57 }
 0x103   : > { %688 = vst [vmem:[%s1192_s14 + $0x90] sm:$0xff] %v618_v36  ;;  %689 = vst [vmem:[%s1192_s14 + $0x98] sm:$0xff] %v619_v58 }
 0x104   : > { %859 = shalt.err (!%p856_p3)
}
 0x105   : > { %s860_s28 = scalar_lea.hbm %s1333_s23, 2560  ;;  %s864_s3 = scalar_lea.hbm %s1386_s2, 10240 }
 0x106   : > { %p861_p4 = scmp.ne.s32.totalorder %s1333_s23, %s860_s28  ;;  %p865_p9 = scmp.lt.u32.totalorder %s1333_s23, %s1386_s2 }
 0x107   : > { %p866_p10 = scmp.lt.u32.totalorder %s864_s3, %s860_s28  ;;  %p868_p12 = scmp.lt.u32.totalorder %s860_s28, %s1333_s23 }
 0x108   : > { %p862_p7 = pnand %p861_p4, %p975_p5 }
 0x109   : > { %p867_p11 = por %p866_p10, %p865_p9 }
 0x10a   : > { %p863_p8 = pneg %p862_p7 }
 0x10b   : > { %p869_p13 = por %p868_p12, %p867_p11 }
 0x10d   : > { %p870_p0 = pnand %p869_p13, %p863_p8 }
 0x10f   : > { %873 = shalt.err (!%p870_p0)
}
 0x110   : > { %s919_s6 = smov 512   ;;  %s920_s7 = smov 2048  }
 0x111   : > { %s921_s8 = smov 32  }
 0x112   : > { %794 = dma.vmem_to_hbm [thread:$0]  (%p975_p5), %s1335_s17, 2560, %s1333_s23, %s1343_s13, %s919_s6, %s920_s7, %s921_s8  }
 0x113 PF: > { %p800_p1 = scmp.ge.s32.totalorder %s908_s12, 2  ;;  %s719_s14 = sand.u32 1, %s896_s9  }
 0x114   : > { %s720_s16 = scalar_lea.sflag [#allocation3], %s719_s14 }
 0x115   : > { %p797_p2 = pnand %p800_p1, %p979_p6 }
 0x117   : > { %891 = dma.done.wait (!%p797_p2), %s720_s16, 2560  }
 0x118   : > { %893 = vsyncadd (!%p797_p2), %s720_s16, 4294964736  ;;  %p12_p3 = scmp.ge.s32.totalorder %s962_s15, 6   ;;  %s1389_s9 = smov %s900_s10 }
 0x119   : > { %s1390_s10 = smov %s904_s11  ;;  %s1391_s11 = smov %s973_s18 }
 0x11a   : > { %s1392_s12 = smov %s962_s15  ;;  %14 = sbr.rel (!%p12_p3) target bundleno = 3 (0x3), region = 63 }
 0x121   :  { %725 = vsyncpa [#allocation3], 1 }
 0x122   :  { %727 = vsyncpa [#allocation3 + $0x1], 1 }

</bundles_post_ra>
